<compile_context>
chip_gen: v6e
topology: v6e:2x2x1
jax: 0.10.0
libtpu: 0.0.40
codegen_flags: <defaults>
</compile_context>

<pallas_src>
import jax
import jax.numpy as jnp
import numpy as np
from jax import lax
from jax.experimental import pallas as pl
from jax.experimental.pallas import tpu as pltpu

NUM_CLASSES = 96
H_IN = 22  # fixed input height, fully consumed by conv1's (22, 3) kernel


def _fused_conv_pool_relu(h, w, b, tb):
  """relu(avgpool_w2(conv_k3(h))) as an exact 4-tap stride-2 conv.

  h: [M, Cin] flat activations, M = tb * L (width-major within each sample)
  w: [4, Cin, Cout] pool-folded taps (0.5*w0, 0.5*(w0+w1), 0.5*(w1+w2), 0.5*w2)
  b: [1, Cout]
  returns [M//2, Cout] flat.
  """
  M, cin = h.shape
  M2 = M // 2
  L2 = M2 // tb
  hp = h.reshape(M2, 2, cin)              # adjacent width pairs (same sample)
  even = hp[:, 0, :]                      # h[2j]
  odd = hp[:, 1, :]                       # h[2j+1]
  zrow = jnp.zeros((1, cin), h.dtype)
  tap0 = jnp.concatenate([zrow, odd[:M2 - 1, :]], axis=0)    # h[2j-1]
  tap3 = jnp.concatenate([even[1:, :], zrow], axis=0)        # h[2j+2]
  # zero rows whose shifted source crossed a sample boundary (j==0 / j==L2-1)
  jj = lax.broadcasted_iota(jnp.int32, (tb, L2, cin), 1).reshape(M2, cin)
  tap0 = jnp.where(jj == 0, jnp.zeros_like(tap0), tap0)
  tap3 = jnp.where(jj == L2 - 1, jnp.zeros_like(tap3), tap3)
  y = (jnp.dot(tap0, w[0], preferred_element_type=jnp.float32)
       + jnp.dot(even, w[1], preferred_element_type=jnp.float32)
       + jnp.dot(odd, w[2], preferred_element_type=jnp.float32)
       + jnp.dot(tap3, w[3], preferred_element_type=jnp.float32)
       + b)
  return jnp.maximum(y, 0.0).astype(h.dtype)


def _snn_kernel(x_ref, w1_ref, b1_ref, w2_ref, b2_ref, w3_ref, b3_ref,
                ws_ref, wl_ref, wf_ref, b4_ref, o_ref):
  tb, wh, k1 = x_ref.shape
  cd = x_ref.dtype
  # layer 1: conv1(22x3) + pool1, im2col'd host-side -> single K=88 matmul
  x = x_ref[...].reshape(tb * wh, k1)
  h = jnp.dot(x, w1_ref[...], preferred_element_type=jnp.float32) + b1_ref[...]
  h = jnp.maximum(h, 0.0).astype(cd)                               # [tb*wh, 64]
  # layers 2, 3: conv(1x3)+pool+relu fused as 4-tap stride-2 convs
  h = _fused_conv_pool_relu(h, w2_ref[...], b2_ref[...], tb)       # [tb*wh/2, 128]
  h = _fused_conv_pool_relu(h, w3_ref[...], b3_ref[...], tb)       # [tb*wh/4, 256]
  # layer 4 + width-mean, folded (exact): b4 + (S@(w0+w1+w2) - last@w0 - first@w2)/L
  M, c = h.shape
  l4 = M // tb
  h3 = h.reshape(tb, l4, c)
  s = jnp.sum(h3, axis=1).astype(cd)                               # [tb, 256]
  first = h3[:, 0, :]
  last = h3[:, l4 - 1, :]
  out = (jnp.dot(s, ws_ref[...], preferred_element_type=jnp.float32)
         - jnp.dot(last, wl_ref[...], preferred_element_type=jnp.float32)
         - jnp.dot(first, wf_ref[...], preferred_element_type=jnp.float32)
         + b4_ref[...])
  o_ref[0] = out                                                   # [tb, ncp]


def simple_nn_1dcnn_pallas(x_nchw, params, *, compute_dtype=jnp.float32):
  """x_nchw: [bs, 1, 22, W] -> [bs, num_classes].  Requires W % 8 == 0 and W >= 16."""
  w1, b1, w2, b2, w3, b3, w4, b4 = params  # PyTorch OIHW weights / [C] biases
  bs, cin, hin, W = x_nchw.shape
  assert cin == 1 and hin == H_IN
  assert W % 8 == 0 and W >= 16
  wh = W // 2                   # width after pool1
  l4 = W // 8                   # width entering conv4
  nc = b4.shape[0]
  ncp = ((nc + 127) // 128) * 128   # pad classes to a lane-dense multiple of 128
  cd = compute_dtype

  # ---- host-side layout / weight prep (plain JAX, tiny) ----
  # NCHW -> [bs, W, 22]; im2col the fused (conv1 + pool1) receptive field (stride 2).
  x_wc = jnp.transpose(x_nchw[:, 0], (0, 2, 1))                    # [bs, W, 22]
  xp = jnp.pad(x_wc, ((0, 0), (1, 1), (0, 0)))                     # width pad 1/1
  x1 = jnp.concatenate([xp[:, k:k + W:2, :] for k in range(4)], axis=-1)  # [bs, wh, 88]

  def taps(w):                  # OIHW [O,C,1,3] -> per-width-tap [C,O]
    return [jnp.transpose(w[:, :, 0, k]) for k in range(3)]

  def fold_pool(t):             # fold avgpool(1,2) into the conv (exact)
    return [0.5 * t[0], 0.5 * (t[0] + t[1]), 0.5 * (t[1] + t[2]), 0.5 * t[2]]

  t1 = [jnp.transpose(w1[:, 0, :, k]) for k in range(3)]           # [22, 64] each
  w1m = jnp.concatenate(fold_pool(t1), axis=0)                     # [88, 64]
  w2f = jnp.stack(fold_pool(taps(w2)), axis=0)                     # [4, 64, 128]
  w3f = jnp.stack(fold_pool(taps(w3)), axis=0)                     # [4, 128, 256]
  t4 = taps(w4)                                                    # [256, nc] each
  padn = lambda m: jnp.pad(m, ((0, 0), (0, ncp - nc)))
  ws = padn((t4[0] + t4[1] + t4[2]) / l4)                          # applied to sum_i h[i]
  wl = padn(t4[0] / l4)                                            # applied to h[last]
  wf = padn(t4[2] / l4)                                            # applied to h[first]
  b1r, b2r, b3r = (b.reshape(1, -1).astype(jnp.float32) for b in (b1, b2, b3))
  b4r = jnp.pad(b4, (0, ncp - nc)).reshape(1, ncp).astype(jnp.float32)

  x1 = x1.astype(cd)
  w1m, w2f, w3f, ws, wl, wf = (a.astype(cd) for a in (w1m, w2f, w3f, ws, wl, wf))

  # ---- batch tiling: TB samples per grid step so MXU sees M = TB*W/2 (~512) ----
  tb = max(1, min(bs, (512 + wh - 1) // wh))
  n_tiles = (bs + tb - 1) // tb
  bs_pad = n_tiles * tb
  if bs_pad != bs:
    x1 = jnp.pad(x1, ((0, bs_pad - bs), (0, 0), (0, 0)))

  full = lambda a: pl.BlockSpec(a.shape, lambda i, _nd=a.ndim: (0,) * _nd)
  out = pl.pallas_call(
      _snn_kernel,
      out_shape=jax.ShapeDtypeStruct((n_tiles, tb, ncp), jnp.float32),
      grid=(n_tiles,),
      in_specs=[
          pl.BlockSpec((tb, wh, x1.shape[-1]), lambda i: (i, 0, 0)),
          full(w1m), full(b1r),
          full(w2f), full(b2r),
          full(w3f), full(b3r),
          full(ws), full(wl), full(wf), full(b4r),
      ],
      out_specs=pl.BlockSpec((1, tb, ncp), lambda i: (i, 0, 0)),
      compiler_params=pltpu.CompilerParams(
          dimension_semantics=("parallel",)),
  )(x1, w1m, b1r, w2f, b2r, w3f, b3r, ws, wl, wf, b4r)
  return out.reshape(bs_pad, ncp)[:bs, :nc]


def _reference_forward(x, params):
  """Pure-JAX reference matching the PyTorch module (NCHW / OIHW)."""
  w1, b1, w2, b2, w3, b3, w4, b4 = params

  def conv(x, w, b):
    y = lax.conv_general_dilated(
        x, w, window_strides=(1, 1), padding=((0, 0), (1, 1)),
        dimension_numbers=("NCHW", "OIHW", "NCHW"))
    return y + b[None, :, None, None]

  def pool(x):
    n, c, hh, ww = x.shape
    return x.reshape(n, c, hh, ww // 2, 2).mean(-1)

  h = jax.nn.relu(pool(conv(x, w1, b1)))
  h = jax.nn.relu(pool(conv(h, w2, b2)))
  h = jax.nn.relu(pool(conv(h, w3, b3)))
  h = conv(h, w4, b4)
  h = h[:, :, 0, :]          # squeeze(dim=2)
  return h.mean(-1)          # mean over width


def _init_params(key):
  ks = jax.random.split(key, 8)
  def w(k, shape, fan_in):
    return (jax.random.normal(k, shape, jnp.float32) / np.sqrt(fan_in)).astype(jnp.float32)
  w1 = w(ks[0], (64, 1, 22, 3), 1 * 22 * 3)
  b1 = 0.01 * jax.random.normal(ks[1], (64,), jnp.float32)
  w2 = w(ks[2], (128, 64, 1, 3), 64 * 3)
  b2 = 0.01 * jax.random.normal(ks[3], (128,), jnp.float32)
  w3 = w(ks[4], (256, 128, 1, 3), 128 * 3)
  b3 = 0.01 * jax.random.normal(ks[5], (256,), jnp.float32)
  w4 = w(ks[6], (NUM_CLASSES, 256, 1, 3), 256 * 3)
  b4 = 0.01 * jax.random.normal(ks[7], (NUM_CLASSES,), jnp.float32)
  return (w1, b1, w2, b2, w3, b3, w4, b4)


if __name__ == "__main__":
  key = jax.random.PRNGKey(0)
  k_x, k_p = jax.random.split(key)
  bs, W = 2, 16
  x = jax.random.normal(k_x, (bs, 1, H_IN, W), jnp.float32)
  params = _init_params(k_p)

  fwd = jax.jit(lambda xx: simple_nn_1dcnn_pallas(xx, params))
  out = jax.block_until_ready(fwd(x))
  ref = jax.block_until_ready(_reference_forward(x, params))

  assert out.shape == (bs, NUM_CLASSES)
  np.testing.assert_allclose(np.asarray(out), np.asarray(ref), rtol=1e-2, atol=1e-2)
  print("KERNEL_OK")
</pallas_src>

<mosaic_0001>
module attributes {stable_mosaic.version = 11 : i64} {
  func.func @_snn_kernel(%arg0: i32, %arg1: memref<2x8x88xf32, #tpu.memory_space<vmem>>, %arg2: memref<88x64xf32, #tpu.memory_space<vmem>>, %arg3: memref<1x64xf32, #tpu.memory_space<vmem>>, %arg4: memref<4x64x128xf32, #tpu.memory_space<vmem>>, %arg5: memref<1x128xf32, #tpu.memory_space<vmem>>, %arg6: memref<4x128x256xf32, #tpu.memory_space<vmem>>, %arg7: memref<1x256xf32, #tpu.memory_space<vmem>>, %arg8: memref<256x128xf32, #tpu.memory_space<vmem>>, %arg9: memref<256x128xf32, #tpu.memory_space<vmem>>, %arg10: memref<256x128xf32, #tpu.memory_space<vmem>>, %arg11: memref<1x128xf32, #tpu.memory_space<vmem>>, %arg12: memref<1x2x128xf32, #tpu.memory_space<vmem>>) attributes {dimension_semantics = [#tpu.dimension_semantics<parallel>], iteration_bounds = array<i64: 1>, scalar_prefetch = 0 : i64, scratch_operands = 0 : i64, tpu.core_type = #tpu.core_type<tc>, window_params = [{transform_indices = @transform_0, window_bounds = array<i64: 2, 8, 88>}, {pipeline_mode = #tpu.pipeline_mode<synchronous>, transform_indices = @transform_1, window_bounds = array<i64: 88, 64>}, {pipeline_mode = #tpu.pipeline_mode<synchronous>, transform_indices = @transform_2, window_bounds = array<i64: 1, 64>}, {pipeline_mode = #tpu.pipeline_mode<synchronous>, transform_indices = @transform_3, window_bounds = array<i64: 4, 64, 128>}, {pipeline_mode = #tpu.pipeline_mode<synchronous>, transform_indices = @transform_4, window_bounds = array<i64: 1, 128>}, {pipeline_mode = #tpu.pipeline_mode<synchronous>, transform_indices = @transform_5, window_bounds = array<i64: 4, 128, 256>}, {pipeline_mode = #tpu.pipeline_mode<synchronous>, transform_indices = @transform_6, window_bounds = array<i64: 1, 256>}, {pipeline_mode = #tpu.pipeline_mode<synchronous>, transform_indices = @transform_7, window_bounds = array<i64: 256, 128>}, {pipeline_mode = #tpu.pipeline_mode<synchronous>, transform_indices = @transform_8, window_bounds = array<i64: 256, 128>}, {pipeline_mode = #tpu.pipeline_mode<synchronous>, transform_indices = @transform_9, window_bounds = array<i64: 256, 128>}, {pipeline_mode = #tpu.pipeline_mode<synchronous>, transform_indices = @transform_10, window_bounds = array<i64: 1, 128>}, {transform_indices = @transform_11, window_bounds = array<i64: 1, 2, 128>}]} {
    %c0 = arith.constant 0 : index
    %c0_0 = arith.constant 0 : index
    %c0_1 = arith.constant 0 : index
    %0 = vector.load %arg1[%c0, %c0_0, %c0_1] : memref<2x8x88xf32, #tpu.memory_space<vmem>>, vector<2x8x88xf32>
    %1 = vector.shape_cast %0 : vector<2x8x88xf32> to vector<16x88xf32>
    %c0_2 = arith.constant 0 : index
    %c0_3 = arith.constant 0 : index
    %2 = vector.load %arg2[%c0_2, %c0_3] : memref<88x64xf32, #tpu.memory_space<vmem>>, vector<88x64xf32>
    %cst = arith.constant dense<0.000000e+00> : vector<16x64xf32>
    %3 = tpu.matmul %1, %2, %cst {dimension_numbers = #tpu.dot_dimension_numbers<[1], [0], [0], [1], [0, 0, 1, 1], [], []>} : vector<16x88xf32>, vector<88x64xf32>, vector<16x64xf32> -> vector<16x64xf32>
    %c0_4 = arith.constant 0 : index
    %c0_5 = arith.constant 0 : index
    %4 = vector.load %arg3[%c0_4, %c0_5] : memref<1x64xf32, #tpu.memory_space<vmem>>, vector<1x64xf32>
    %5 = vector.broadcast %4 : vector<1x64xf32> to vector<16x64xf32>
    %6 = arith.addf %3, %5 : vector<16x64xf32>
    %cst_6 = arith.constant 0.000000e+00 : f32
    %7 = vector.broadcast %cst_6 : f32 to vector<16x64xf32>
    %8 = arith.maximumf %6, %7 : vector<16x64xf32>
    %c0_7 = arith.constant 0 : index
    %c0_8 = arith.constant 0 : index
    %c0_9 = arith.constant 0 : index
    %9 = vector.load %arg4[%c0_7, %c0_8, %c0_9] : memref<4x64x128xf32, #tpu.memory_space<vmem>>, vector<4x64x128xf32>
    %c0_10 = arith.constant 0 : index
    %c0_11 = arith.constant 0 : index
    %10 = vector.load %arg5[%c0_10, %c0_11] : memref<1x128xf32, #tpu.memory_space<vmem>>, vector<1x128xf32>
    %11 = vector.shape_cast %8 : vector<16x64xf32> to vector<8x2x64xf32>
    %12 = vector.extract_strided_slice %11 {offsets = [0, 0, 0], sizes = [8, 1, 64], strides = [1, 1, 1]} : vector<8x2x64xf32> to vector<8x1x64xf32>
    %13 = vector.shape_cast %12 : vector<8x1x64xf32> to vector<8x64xf32>
    %14 = vector.extract_strided_slice %11 {offsets = [0, 1, 0], sizes = [8, 1, 64], strides = [1, 1, 1]} : vector<8x2x64xf32> to vector<8x1x64xf32>
    %15 = vector.shape_cast %14 : vector<8x1x64xf32> to vector<8x64xf32>
    %cst_12 = arith.constant 0.000000e+00 : f32
    %16 = vector.broadcast %cst_12 : f32 to vector<1x64xf32>
    %17 = vector.extract_strided_slice %15 {offsets = [0, 0], sizes = [7, 64], strides = [1, 1]} : vector<8x64xf32> to vector<7x64xf32>
    %18 = tpu.concatenate %16, %17 in 0 : vector<1x64xf32>, vector<7x64xf32> -> vector<8x64xf32>
    %19 = vector.extract_strided_slice %13 {offsets = [1, 0], sizes = [7, 64], strides = [1, 1]} : vector<8x64xf32> to vector<7x64xf32>
    %20 = tpu.concatenate %19, %16 in 0 : vector<7x64xf32>, vector<1x64xf32> -> vector<8x64xf32>
    %21 = tpu.iota {dimensions = array<i32: 1>} : vector<2x4x64xi32>
    %22 = vector.shape_cast %21 : vector<2x4x64xi32> to vector<8x64xi32>
    %c0_i32 = arith.constant 0 : i32
    %23 = vector.broadcast %c0_i32 : i32 to vector<8x64xi32>
    %24 = arith.cmpi eq, %22, %23 : vector<8x64xi32>
    %cst_13 = arith.constant 0.000000e+00 : f32
    %25 = vector.broadcast %cst_13 : f32 to vector<8x64xf32>
    %26 = arith.select %24, %25, %18 : vector<8x64xi1>, vector<8x64xf32>
    %c3_i32 = arith.constant 3 : i32
    %27 = vector.broadcast %c3_i32 : i32 to vector<8x64xi32>
    %28 = arith.cmpi eq, %22, %27 : vector<8x64xi32>
    %cst_14 = arith.constant 0.000000e+00 : f32
    %29 = vector.broadcast %cst_14 : f32 to vector<8x64xf32>
    %30 = arith.select %28, %29, %20 : vector<8x64xi1>, vector<8x64xf32>
    %31 = vector.extract_strided_slice %9 {offsets = [0, 0, 0], sizes = [1, 64, 128], strides = [1, 1, 1]} : vector<4x64x128xf32> to vector<1x64x128xf32>
    %32 = vector.shape_cast %31 : vector<1x64x128xf32> to vector<64x128xf32>
    %cst_15 = arith.constant dense<0.000000e+00> : vector<8x128xf32>
    %33 = tpu.matmul %26, %32, %cst_15 {dimension_numbers = #tpu.dot_dimension_numbers<[1], [0], [0], [1], [0, 0, 1, 1], [], []>} : vector<8x64xf32>, vector<64x128xf32>, vector<8x128xf32> -> vector<8x128xf32>
    %34 = vector.extract_strided_slice %9 {offsets = [1, 0, 0], sizes = [1, 64, 128], strides = [1, 1, 1]} : vector<4x64x128xf32> to vector<1x64x128xf32>
    %35 = vector.shape_cast %34 : vector<1x64x128xf32> to vector<64x128xf32>
    %cst_16 = arith.constant dense<0.000000e+00> : vector<8x128xf32>
    %36 = tpu.matmul %13, %35, %cst_16 {dimension_numbers = #tpu.dot_dimension_numbers<[1], [0], [0], [1], [0, 0, 1, 1], [], []>} : vector<8x64xf32>, vector<64x128xf32>, vector<8x128xf32> -> vector<8x128xf32>
    %37 = arith.addf %33, %36 : vector<8x128xf32>
    %38 = vector.extract_strided_slice %9 {offsets = [2, 0, 0], sizes = [1, 64, 128], strides = [1, 1, 1]} : vector<4x64x128xf32> to vector<1x64x128xf32>
    %39 = vector.shape_cast %38 : vector<1x64x128xf32> to vector<64x128xf32>
    %cst_17 = arith.constant dense<0.000000e+00> : vector<8x128xf32>
    %40 = tpu.matmul %15, %39, %cst_17 {dimension_numbers = #tpu.dot_dimension_numbers<[1], [0], [0], [1], [0, 0, 1, 1], [], []>} : vector<8x64xf32>, vector<64x128xf32>, vector<8x128xf32> -> vector<8x128xf32>
    %41 = arith.addf %37, %40 : vector<8x128xf32>
    %42 = vector.extract_strided_slice %9 {offsets = [3, 0, 0], sizes = [1, 64, 128], strides = [1, 1, 1]} : vector<4x64x128xf32> to vector<1x64x128xf32>
    %43 = vector.shape_cast %42 : vector<1x64x128xf32> to vector<64x128xf32>
    %cst_18 = arith.constant dense<0.000000e+00> : vector<8x128xf32>
    %44 = tpu.matmul %30, %43, %cst_18 {dimension_numbers = #tpu.dot_dimension_numbers<[1], [0], [0], [1], [0, 0, 1, 1], [], []>} : vector<8x64xf32>, vector<64x128xf32>, vector<8x128xf32> -> vector<8x128xf32>
    %45 = arith.addf %41, %44 : vector<8x128xf32>
    %46 = vector.broadcast %10 : vector<1x128xf32> to vector<8x128xf32>
    %47 = arith.addf %45, %46 : vector<8x128xf32>
    %cst_19 = arith.constant 0.000000e+00 : f32
    %48 = vector.broadcast %cst_19 : f32 to vector<8x128xf32>
    %49 = arith.maximumf %47, %48 : vector<8x128xf32>
    %c0_20 = arith.constant 0 : index
    %c0_21 = arith.constant 0 : index
    %c0_22 = arith.constant 0 : index
    %50 = vector.load %arg6[%c0_20, %c0_21, %c0_22] : memref<4x128x256xf32, #tpu.memory_space<vmem>>, vector<4x128x256xf32>
    %c0_23 = arith.constant 0 : index
    %c0_24 = arith.constant 0 : index
    %51 = vector.load %arg7[%c0_23, %c0_24] : memref<1x256xf32, #tpu.memory_space<vmem>>, vector<1x256xf32>
    %52 = vector.shape_cast %49 : vector<8x128xf32> to vector<4x2x128xf32>
    %53 = vector.extract_strided_slice %52 {offsets = [0, 0, 0], sizes = [4, 1, 128], strides = [1, 1, 1]} : vector<4x2x128xf32> to vector<4x1x128xf32>
    %54 = vector.shape_cast %53 : vector<4x1x128xf32> to vector<4x128xf32>
    %55 = vector.extract_strided_slice %52 {offsets = [0, 1, 0], sizes = [4, 1, 128], strides = [1, 1, 1]} : vector<4x2x128xf32> to vector<4x1x128xf32>
    %56 = vector.shape_cast %55 : vector<4x1x128xf32> to vector<4x128xf32>
    %cst_25 = arith.constant 0.000000e+00 : f32
    %57 = vector.broadcast %cst_25 : f32 to vector<1x128xf32>
    %58 = vector.extract_strided_slice %56 {offsets = [0, 0], sizes = [3, 128], strides = [1, 1]} : vector<4x128xf32> to vector<3x128xf32>
    %59 = tpu.concatenate %57, %58 in 0 : vector<1x128xf32>, vector<3x128xf32> -> vector<4x128xf32>
    %60 = vector.extract_strided_slice %54 {offsets = [1, 0], sizes = [3, 128], strides = [1, 1]} : vector<4x128xf32> to vector<3x128xf32>
    %61 = tpu.concatenate %60, %57 in 0 : vector<3x128xf32>, vector<1x128xf32> -> vector<4x128xf32>
    %62 = tpu.iota {dimensions = array<i32: 1>} : vector<2x2x128xi32>
    %63 = vector.shape_cast %62 : vector<2x2x128xi32> to vector<4x128xi32>
    %c0_i32_26 = arith.constant 0 : i32
    %64 = vector.broadcast %c0_i32_26 : i32 to vector<4x128xi32>
    %65 = arith.cmpi eq, %63, %64 : vector<4x128xi32>
    %cst_27 = arith.constant 0.000000e+00 : f32
    %66 = vector.broadcast %cst_27 : f32 to vector<4x128xf32>
    %67 = arith.select %65, %66, %59 : vector<4x128xi1>, vector<4x128xf32>
    %c1_i32 = arith.constant 1 : i32
    %68 = vector.broadcast %c1_i32 : i32 to vector<4x128xi32>
    %69 = arith.cmpi eq, %63, %68 : vector<4x128xi32>
    %cst_28 = arith.constant 0.000000e+00 : f32
    %70 = vector.broadcast %cst_28 : f32 to vector<4x128xf32>
    %71 = arith.select %69, %70, %61 : vector<4x128xi1>, vector<4x128xf32>
    %72 = vector.extract_strided_slice %50 {offsets = [0, 0, 0], sizes = [1, 128, 256], strides = [1, 1, 1]} : vector<4x128x256xf32> to vector<1x128x256xf32>
    %73 = vector.shape_cast %72 : vector<1x128x256xf32> to vector<128x256xf32>
    %cst_29 = arith.constant dense<0.000000e+00> : vector<4x256xf32>
    %74 = tpu.matmul %67, %73, %cst_29 {dimension_numbers = #tpu.dot_dimension_numbers<[1], [0], [0], [1], [0, 0, 1, 1], [], []>} : vector<4x128xf32>, vector<128x256xf32>, vector<4x256xf32> -> vector<4x256xf32>
    %75 = vector.extract_strided_slice %50 {offsets = [1, 0, 0], sizes = [1, 128, 256], strides = [1, 1, 1]} : vector<4x128x256xf32> to vector<1x128x256xf32>
    %76 = vector.shape_cast %75 : vector<1x128x256xf32> to vector<128x256xf32>
    %cst_30 = arith.constant dense<0.000000e+00> : vector<4x256xf32>
    %77 = tpu.matmul %54, %76, %cst_30 {dimension_numbers = #tpu.dot_dimension_numbers<[1], [0], [0], [1], [0, 0, 1, 1], [], []>} : vector<4x128xf32>, vector<128x256xf32>, vector<4x256xf32> -> vector<4x256xf32>
    %78 = arith.addf %74, %77 : vector<4x256xf32>
    %79 = vector.extract_strided_slice %50 {offsets = [2, 0, 0], sizes = [1, 128, 256], strides = [1, 1, 1]} : vector<4x128x256xf32> to vector<1x128x256xf32>
    %80 = vector.shape_cast %79 : vector<1x128x256xf32> to vector<128x256xf32>
    %cst_31 = arith.constant dense<0.000000e+00> : vector<4x256xf32>
    %81 = tpu.matmul %56, %80, %cst_31 {dimension_numbers = #tpu.dot_dimension_numbers<[1], [0], [0], [1], [0, 0, 1, 1], [], []>} : vector<4x128xf32>, vector<128x256xf32>, vector<4x256xf32> -> vector<4x256xf32>
    %82 = arith.addf %78, %81 : vector<4x256xf32>
    %83 = vector.extract_strided_slice %50 {offsets = [3, 0, 0], sizes = [1, 128, 256], strides = [1, 1, 1]} : vector<4x128x256xf32> to vector<1x128x256xf32>
    %84 = vector.shape_cast %83 : vector<1x128x256xf32> to vector<128x256xf32>
    %cst_32 = arith.constant dense<0.000000e+00> : vector<4x256xf32>
    %85 = tpu.matmul %71, %84, %cst_32 {dimension_numbers = #tpu.dot_dimension_numbers<[1], [0], [0], [1], [0, 0, 1, 1], [], []>} : vector<4x128xf32>, vector<128x256xf32>, vector<4x256xf32> -> vector<4x256xf32>
    %86 = arith.addf %82, %85 : vector<4x256xf32>
    %87 = vector.broadcast %51 : vector<1x256xf32> to vector<4x256xf32>
    %88 = arith.addf %86, %87 : vector<4x256xf32>
    %cst_33 = arith.constant 0.000000e+00 : f32
    %89 = vector.broadcast %cst_33 : f32 to vector<4x256xf32>
    %90 = arith.maximumf %88, %89 : vector<4x256xf32>
    %91 = vector.shape_cast %90 : vector<4x256xf32> to vector<2x2x256xf32>
    %cst_34 = arith.constant dense<0.000000e+00> : vector<2x256xf32>
    %92 = vector.multi_reduction <add>, %91, %cst_34 [1] : vector<2x2x256xf32> to vector<2x256xf32>
    %93 = vector.extract_strided_slice %91 {offsets = [0, 0, 0], sizes = [2, 1, 256], strides = [1, 1, 1]} : vector<2x2x256xf32> to vector<2x1x256xf32>
    %94 = vector.shape_cast %93 : vector<2x1x256xf32> to vector<2x256xf32>
    %95 = vector.extract_strided_slice %91 {offsets = [0, 1, 0], sizes = [2, 1, 256], strides = [1, 1, 1]} : vector<2x2x256xf32> to vector<2x1x256xf32>
    %96 = vector.shape_cast %95 : vector<2x1x256xf32> to vector<2x256xf32>
    %c0_35 = arith.constant 0 : index
    %c0_36 = arith.constant 0 : index
    %97 = vector.load %arg8[%c0_35, %c0_36] : memref<256x128xf32, #tpu.memory_space<vmem>>, vector<256x128xf32>
    %cst_37 = arith.constant dense<0.000000e+00> : vector<2x128xf32>
    %98 = tpu.matmul %92, %97, %cst_37 {dimension_numbers = #tpu.dot_dimension_numbers<[1], [0], [0], [1], [0, 0, 1, 1], [], []>} : vector<2x256xf32>, vector<256x128xf32>, vector<2x128xf32> -> vector<2x128xf32>
    %c0_38 = arith.constant 0 : index
    %c0_39 = arith.constant 0 : index
    %99 = vector.load %arg9[%c0_38, %c0_39] : memref<256x128xf32, #tpu.memory_space<vmem>>, vector<256x128xf32>
    %cst_40 = arith.constant dense<0.000000e+00> : vector<2x128xf32>
    %100 = tpu.matmul %96, %99, %cst_40 {dimension_numbers = #tpu.dot_dimension_numbers<[1], [0], [0], [1], [0, 0, 1, 1], [], []>} : vector<2x256xf32>, vector<256x128xf32>, vector<2x128xf32> -> vector<2x128xf32>
    %101 = arith.subf %98, %100 : vector<2x128xf32>
    %c0_41 = arith.constant 0 : index
    %c0_42 = arith.constant 0 : index
    %102 = vector.load %arg10[%c0_41, %c0_42] : memref<256x128xf32, #tpu.memory_space<vmem>>, vector<256x128xf32>
    %cst_43 = arith.constant dense<0.000000e+00> : vector<2x128xf32>
    %103 = tpu.matmul %94, %102, %cst_43 {dimension_numbers = #tpu.dot_dimension_numbers<[1], [0], [0], [1], [0, 0, 1, 1], [], []>} : vector<2x256xf32>, vector<256x128xf32>, vector<2x128xf32> -> vector<2x128xf32>
    %104 = arith.subf %101, %103 : vector<2x128xf32>
    %c0_44 = arith.constant 0 : index
    %c0_45 = arith.constant 0 : index
    %105 = vector.load %arg11[%c0_44, %c0_45] : memref<1x128xf32, #tpu.memory_space<vmem>>, vector<1x128xf32>
    %106 = vector.broadcast %105 : vector<1x128xf32> to vector<2x128xf32>
    %107 = arith.addf %104, %106 : vector<2x128xf32>
    %c0_46 = arith.constant 0 : index
    %c0_47 = arith.constant 0 : index
    %c0_48 = arith.constant 0 : index
    %108 = vector.load %arg12[%c0_46, %c0_47, %c0_48] : memref<1x2x128xf32, #tpu.memory_space<vmem>>, vector<1x2x128xf32>
    %109 = vector.shape_cast %108 : vector<1x2x128xf32> to vector<2x128xf32>
    %110 = vector.shape_cast %107 : vector<2x128xf32> to vector<1x2x128xf32>
    tpu.vector_store %arg12[%c0_46, %c0_47, %c0_48], %110 {strides = array<i32>} : memref<1x2x128xf32, #tpu.memory_space<vmem>>, vector<1x2x128xf32>,
    return
  }
  func.func @transform_0(%arg0: i32) -> (i32, i32, i32) {
    %c0_i32 = arith.constant 0 : i32
    %c0_i32_0 = arith.constant 0 : i32
    %c0_i32_1 = arith.constant 0 : i32
    return %arg0, %c0_i32, %c0_i32_0 : i32, i32, i32
  }
  func.func @transform_1(%arg0: i32) -> (i32, i32) {
    %c0_i32 = arith.constant 0 : i32
    %c0_i32_0 = arith.constant 0 : i32
    %c0_i32_1 = arith.constant 0 : i32
    return %c0_i32, %c0_i32_0 : i32, i32
  }
  func.func @transform_2(%arg0: i32) -> (i32, i32) {
    %c0_i32 = arith.constant 0 : i32
    %c0_i32_0 = arith.constant 0 : i32
    %c0_i32_1 = arith.constant 0 : i32
    return %c0_i32, %c0_i32_0 : i32, i32
  }
  func.func @transform_3(%arg0: i32) -> (i32, i32, i32) {
    %c0_i32 = arith.constant 0 : i32
    %c0_i32_0 = arith.constant 0 : i32
    %c0_i32_1 = arith.constant 0 : i32
    %c0_i32_2 = arith.constant 0 : i32
    return %c0_i32, %c0_i32_0, %c0_i32_1 : i32, i32, i32
  }
  func.func @transform_4(%arg0: i32) -> (i32, i32) {
    %c0_i32 = arith.constant 0 : i32
    %c0_i32_0 = arith.constant 0 : i32
    %c0_i32_1 = arith.constant 0 : i32
    return %c0_i32, %c0_i32_0 : i32, i32
  }
  func.func @transform_5(%arg0: i32) -> (i32, i32, i32) {
    %c0_i32 = arith.constant 0 : i32
    %c0_i32_0 = arith.constant 0 : i32
    %c0_i32_1 = arith.constant 0 : i32
    %c0_i32_2 = arith.constant 0 : i32
    return %c0_i32, %c0_i32_0, %c0_i32_1 : i32, i32, i32
  }
  func.func @transform_6(%arg0: i32) -> (i32, i32) {
    %c0_i32 = arith.constant 0 : i32
    %c0_i32_0 = arith.constant 0 : i32
    %c0_i32_1 = arith.constant 0 : i32
    return %c0_i32, %c0_i32_0 : i32, i32
  }
  func.func @transform_7(%arg0: i32) -> (i32, i32) {
    %c0_i32 = arith.constant 0 : i32
    %c0_i32_0 = arith.constant 0 : i32
    %c0_i32_1 = arith.constant 0 : i32
    return %c0_i32, %c0_i32_0 : i32, i32
  }
  func.func @transform_8(%arg0: i32) -> (i32, i32) {
    %c0_i32 = arith.constant 0 : i32
    %c0_i32_0 = arith.constant 0 : i32
    %c0_i32_1 = arith.constant 0 : i32
    return %c0_i32, %c0_i32_0 : i32, i32
  }
  func.func @transform_9(%arg0: i32) -> (i32, i32) {
    %c0_i32 = arith.constant 0 : i32
    %c0_i32_0 = arith.constant 0 : i32
    %c0_i32_1 = arith.constant 0 : i32
    return %c0_i32, %c0_i32_0 : i32, i32
  }
  func.func @transform_10(%arg0: i32) -> (i32, i32) {
    %c0_i32 = arith.constant 0 : i32
    %c0_i32_0 = arith.constant 0 : i32
    %c0_i32_1 = arith.constant 0 : i32
    return %c0_i32, %c0_i32_0 : i32, i32
  }
  func.func @transform_11(%arg0: i32) -> (i32, i32, i32) {
    %c0_i32 = arith.constant 0 : i32
    %c0_i32_0 = arith.constant 0 : i32
    %c0_i32_1 = arith.constant 0 : i32
    return %arg0, %c0_i32, %c0_i32_0 : i32, i32, i32
  }
}

</mosaic_0001>

<bundles_post_ra>
// kernel: _lambda_.1
= control target key start
LH: loop header
LB: loop body
LE: loop exit
PB: predicated region body
PF: predicated region fallthrough
CT: control target
= control target key end

     0   :  { %16 = vsyncpa [#allocation3], 0  ;;  %s2575_s0 = inlined_call_operand.vmem [shape: f32[2,8,88], index: 0, kind: input, shape index: {}]   ;;  %s2576_s1 = inlined_call_operand.hbm [shape: f32[88,64], index: 1, kind: input, shape index: {}]   ;;  %s2577_s2 = inlined_call_operand.vmem [shape: f32[1,64], index: 2, kind: input, shape index: {}]   ;;  %s2578_s3 = inlined_call_operand.hbm [shape: f32[4,64,128], index: 3, kind: input, shape index: {}]   ;;  %s2579_s4 = inlined_call_operand.vmem [shape: f32[1,128], index: 4, kind: input, shape index: {}]   ;;  %s2580_s5 = inlined_call_operand.hbm [shape: f32[4,128,256], index: 5, kind: input, shape index: {}]   ;;  %s2581_s6 = inlined_call_operand.vmem [shape: f32[1,256], index: 6, kind: input, shape index: {}]   ;;  %s2582_s7 = inlined_call_operand.hbm [shape: f32[256,128], index: 7, kind: input, shape index: {}]   ;;  %s2583_s8 = inlined_call_operand.hbm [shape: f32[256,128], index: 8, kind: input, shape index: {}]   ;;  %s2584_s9 = inlined_call_operand.vmem [shape: f32[256,128], index: 9, kind: input, shape index: {}]   ;;  %s2585_s10 = inlined_call_operand.vmem [shape: f32[1,128], index: 10, kind: input, shape index: {}]   ;;  %s2586_s11 = inlined_call_operand.hbm [shape: f32[1,2,128], index: 11, kind: output, shape index: {}]  }
   0x1   :  { %17 = vsyncpa [#allocation6], 0 }
   0x2   :  { %18 = vsyncpa [#allocation9], 0 }
   0x3   :  { %19 = vsyncpa [#allocation4], 0  ;;  %s2097_s17 = smov [#allocation5]   ;;  %s2098_s19 = smov [#allocation8]  }
   0x4   :  { %s41_s18 = sshll.u32 %s2097_s17, 4  ;;  %s69_s20 = sshll.u32 %s2098_s19, 4  ;;  %s42_s18 = int_to_ptr.vmem [resolvable:$true] %s41_s18  ;;  %s70_s20 = int_to_ptr.vmem [resolvable:$true] %s69_s20 }
   0x5   :  { %s1977_s21 = scalar_lea.vmem %s42_s18, 4096  ;;  %p1982_p1 = scmp.lt.s32.totalorder %s42_s18, %s42_s18 }
   0x6   :  { %p1978_p0 = scmp.ne.s32.totalorder %s42_s18, %s1977_s21  ;;  %p1983_p2 = scmp.lt.s32.totalorder %s1977_s21, %s1977_s21 }
   0x8   :  { %p1984_p3 = por %p1983_p2, %p1982_p1 }
   0xa   :  { %p1985_p4 = pnand %p1984_p3, %p1978_p0 }
   0xc   :  { %1988 = shalt.err (!%p1985_p4)
}
   0xd   :  { %s2099_s22 = smov 128   ;;  %s2100_s23 = smov 8  }
   0xe   :  { %47 = dma.hbm_to_vmem [thread:$0]  %s2578_s3, 4096, %s42_s18, [#allocation6], %s2099_s22, %s2099_s22, %s2100_s23  }
   0xf   :  { %s1997_s26 = scalar_lea.vmem %s70_s20, 4096  ;;  %p2002_p6 = scmp.lt.s32.totalorder %s70_s20, %s70_s20 }
  0x10   :  { %p1998_p5 = scmp.ne.s32.totalorder %s70_s20, %s1997_s26  ;;  %p2003_p7 = scmp.lt.s32.totalorder %s1997_s26, %s1997_s26 }
  0x12   :  { %p2004_p8 = por %p2003_p7, %p2002_p6 }
  0x14   :  { %p2005_p9 = pnand %p2004_p8, %p1998_p5 }
  0x16   :  { %2008 = shalt.err (!%p2005_p9)
}
  0x17   :  { %75 = dma.hbm_to_vmem [thread:$0]  %s2582_s7, 4096, %s70_s20, [#allocation9], %s2099_s22, %s2099_s22, %s2100_s23  }
  0x18   :  { %s2101_s29 = smov [#allocation2]   ;;  %s2102_s12 = smov [#allocation7]  }
  0x19   :  { %s27_s30 = sshll.u32 %s2101_s29, 4  ;;  %s55_s13 = sshll.u32 %s2102_s12, 4  ;;  %s28_s30 = int_to_ptr.vmem [resolvable:$true] %s27_s30  ;;  %s56_s13 = int_to_ptr.vmem [resolvable:$true] %s55_s13 }
  0x1a   :  { %s2017_s3 = scalar_lea.vmem %s28_s30, 1408  ;;  %p2022_p11 = scmp.lt.s32.totalorder %s28_s30, %s28_s30 }
  0x1b   :  { %p2018_p10 = scmp.ne.s32.totalorder %s28_s30, %s2017_s3  ;;  %p2023_p12 = scmp.lt.s32.totalorder %s2017_s3, %s2017_s3 }
  0x1d   :  { %p2024_p13 = por %p2023_p12, %p2022_p11 }
  0x1f   :  { %p2025_p0 = pnand %p2024_p13, %p2018_p10 }
  0x21   :  { %2028 = shalt.err (!%p2025_p0)
}
  0x22   :  { %33 = dma.hbm_to_vmem [thread:$0]  %s2576_s1, 1408, %s28_s30, [#allocation3], %s2099_s22, %s2099_s22, %s2100_s23  }
  0x23   :  { %s2037_s7 = scalar_lea.vmem %s56_s13, 16384  ;;  %p2042_p2 = scmp.lt.s32.totalorder %s56_s13, %s56_s13 }
  0x24   :  { %p2038_p1 = scmp.ne.s32.totalorder %s56_s13, %s2037_s7  ;;  %p2043_p3 = scmp.lt.s32.totalorder %s2037_s7, %s2037_s7 }
  0x26   :  { %p2044_p4 = por %p2043_p3, %p2042_p2 }
  0x28   :  { %p2045_p5 = pnand %p2044_p4, %p2038_p1 }
  0x2a   :  { %2048 = shalt.err (!%p2045_p5)
}
  0x2b   :  { %s2103_s16 = smov 256   ;;  %s2104_s17 = smov 16  }
  0x2c   :  { %61 = dma.hbm_to_vmem [thread:$0]  %s2580_s5, 16384, %s56_s13, [#allocation6], %s2103_s16, %s2103_s16, %s2104_s17  }
  0x2d   :  { %s2105_s20 = smov [#allocation10]  }
  0x2e   :  { %s81_s21 = sshll.u32 %s2105_s20, 4  ;;  %s82_s21 = int_to_ptr.vmem [resolvable:$true] %s81_s21 }
  0x2f   :  { %s2057_s24 = scalar_lea.vmem %s82_s21, 4096  ;;  %p2062_p7 = scmp.lt.s32.totalorder %s82_s21, %s82_s21 }
  0x30   :  { %p2058_p6 = scmp.ne.s32.totalorder %s82_s21, %s2057_s24  ;;  %p2063_p8 = scmp.lt.s32.totalorder %s2057_s24, %s2057_s24 }
  0x32   :  { %p2064_p9 = por %p2063_p8, %p2062_p7 }
  0x34   :  { %p2065_p10 = pnand %p2064_p9, %p2058_p6 }
  0x36   :  { %2068 = shalt.err (!%p2065_p10)
}
  0x37   :  { %87 = dma.hbm_to_vmem [thread:$0]  %s2583_s8, 4096, %s82_s21, [#allocation9], %s2099_s22, %s2099_s22, %s2100_s23  }
  0x38   :  { %2089 = dma.done.wait [#allocation3], 1408  }
  0x39   :  { %2090 = vsyncadd [#allocation3], 4294965888 }
  0x3a   :  { %2091 = dma.done.wait [#allocation6], 20480  }
  0x3b   :  { %2092 = vsyncadd [#allocation6], 4294946816 }
  0x3c   :  { %2093 = dma.done.wait [#allocation9], 8192  }
  0x3d   :  { %2094 = vsyncadd [#allocation9], 4294959104  ;;  %v119_v0 = vld [vmem:[#allocation2 + $0x50] sm:$0xff]  ;;  %v118_v1 = vld [vmem:[#allocation2 + $0x48] sm:$0xff]  ;;  %vm127_vm0 = vcmask 719872   ;;  %v2106_v13 = vmov 0.0   ;;  %v250_v24 = vlaneseq }
  0x3e   :  { %1855 = vmatprep.subr.mxu0 %v119_v0  ;;  %v117_v2 = vld [vmem:[#allocation2 + $0x40] sm:$0xff]  ;;  %v116_v4 = vld [vmem:[#allocation2 + $0x38] sm:$0xff]  ;;  %v115_v5 = vld [vmem:[#allocation2 + $0x30] sm:$0xff]  ;;  %1880 = vmatprep.subr.mxu1 %v2106_v13  ;;  %vm2107_vm1 = vmmov 0   ;;  %v2108_v22 = vmov 1983009808  }
  0x3f   :  { %1856 = vmatpush3.msra.mxu0 %v119_v0  ;;  %v107_v3 = vld [vmem:[%s2575_s0] sm:$0xff]  ;;  %v114_v6 = vld [vmem:[#allocation2 + $0x28] sm:$0xff]  ;;  %v112_v8 = vld [vmem:[#allocation2 + $0x18] sm:$0xff]  ;;  %1896 = vmatprep.mubr.msk.f32.mxu1 %vm2107_vm1, %v2106_v13  ;;  %v248_v23 = vunpack.c.l.s4 %v2108_v22  ;;  %v2220_v27 = vshrl.u32 %v250_v24, 7  ;;  %vm308_vm2 = vcmask 1042434   ;;  %vm310_vm3 = vcmask 1043459  }
  0x40   :  { %1857 = vmatprep.subr.mxu0 %v118_v1  ;;  %1877 = vmatprep.mubr.msk.f32.mxu0 %vm127_vm0, %v107_v3  ;;  %v113_v7 = vld [vmem:[#allocation2 + $0x20] sm:$0xff]  ;;  %v111_v9 = vld [vmem:[#allocation2 + $0x10] sm:$0xff]  ;;  %v110_v10 = vld [vmem:[#allocation2 + $0x8] sm:$0xff]  ;;  %vm351_vm4 = vcmask 1041409   ;;  %vm312_vm5 = vcmask 1044484   ;;  %vm314_vm6 = vcmask 1045509  }
  0x41   :  { %1858 = vmatpush3.msra.mxu0 %v118_v1  ;;  %v109_v11 = vld [vmem:[#allocation2] sm:$0xff]  ;;  %v108_v12 = vld [vmem:[%s2575_s0 + $0x8] sm:$0xff]  ;;  %v226_v14 = vld [vmem:[#allocation5 + $0x78] sm:$0xff]  ;;  %v249_v26 = vunpack.c.0.s8 %v248_v23  ;;  %v2229_v40 = vsub.s32 1, %v2220_v27  ;;  %v2232_v41 = vsub.s32 0, %v2220_v27  ;;  %vm316_vm7 = vcmask 1046534  }
  0x42   :  { %1859 = vmatprep.subr.mxu0 %v117_v2  ;;  %1881 = vmatpush3.msra.mxu1 %v226_v14  ;;  %v225_v15 = vld [vmem:[#allocation5 + $0x70] sm:$0xff]  ;;  %v224_v16 = vld [vmem:[#allocation5 + $0x68] sm:$0xff]  ;;  %v223_v17 = vld [vmem:[#allocation5 + $0x60] sm:$0xff]  ;;  %vm318_vm8 = vcmask 1047559   ;;  %vm386_vm9 = vcmask 523264   ;;  %vm321_vm10 = vcmask 1040384  }
  0x43   :  { %1860 = vmatpush3.msra.mxu0 %v117_v2  ;;  %1882 = vmatprep.subr.mxu1 %v2106_v13  ;;  %v222_v18 = vld [vmem:[#allocation5 + $0x58] sm:$0xff]  ;;  %v221_v19 = vld [vmem:[#allocation5 + $0x50] sm:$0xff]  ;;  %v220_v20 = vld [vmem:[#allocation5 + $0x48] sm:$0xff]  ;;  %v2223_v32 = vsub.s32 %v249_v26, %v2220_v27  ;;  %vm363_vm11 = vcmp.eq.s32.totalorder %v2220_v27, 0  ;;  %vm359_vm12 = vcmask 1046528   ;;  %vm369_vm13 = vcmp.eq.s32.totalorder %v2220_v27, 3 }
  0x44   :  { %1861 = vmatprep.subr.mxu0 %v116_v4  ;;  %1883 = vmatpush3.msra.mxu1 %v225_v15  ;;  %v219_v21 = vld [vmem:[#allocation5 + $0x40] sm:$0xff]  ;;  %v1692_v25 = vld [vmem:[%s2577_s2] ss:$0 sm:$0xff]  ;;  %v234_v26 = vld [vmem:[#allocation5 + $0xb8] sm:$0xff]  ;;  %vm880_vm14 = vcmask 1042432   ;;  %vm895_vm15 = vcmp.eq.s32.totalorder %v2220_v27, 1 }
  0x45   :  { %1862 = vmatpush3.msra.mxu0 %v116_v4  ;;  %1884 = vmatprep.subr.mxu1 %v2106_v13  ;;  %v216_v14 = vld [vmem:[#allocation5 + $0x28] sm:$0xff]  ;;  %v211_v22 = vld [vmem:[#allocation5] sm:$0xff]  ;;  %s2109_s16 = smov [#allocation11]  }
  0x46   :  { %1863 = vmatprep.subr.mxu0 %v115_v5  ;;  %1885 = vmatpush3.msra.mxu1 %v224_v16  ;;  %v215_v16 = vld [vmem:[#allocation5 + $0x20] sm:$0xff]  ;;  %s1681_s17 = sshll.u32 %s2109_s16, 4  ;;  %s1682_s17 = int_to_ptr.vmem [resolvable:$true] %s1681_s17 }
  0x47   :  { %1864 = vmatpush3.msra.mxu0 %v115_v5  ;;  %1886 = vmatprep.subr.mxu1 %v2106_v13  ;;  %s2069_s18 = scalar_lea.vmem %s1682_s17, 32  ;;  %p2074_p12 = scmp.lt.s32.totalorder %s1682_s17, %s1682_s17 }
  0x48   :  { %1865 = vmatprep.subr.mxu0 %v114_v6  ;;  %1887 = vmatpush3.msra.mxu1 %v223_v17  ;;  %v214_v17 = vld [vmem:[#allocation5 + $0x18] sm:$0xff]  ;;  %p2070_p11 = scmp.ne.s32.totalorder %s1682_s17, %s2069_s18  ;;  %p2075_p13 = scmp.lt.s32.totalorder %s2069_s18, %s2069_s18 }
  0x49   :  { %1866 = vmatpush3.msra.mxu0 %v114_v6  ;;  %1888 = vmatprep.subr.mxu1 %v2106_v13 }
  0x4a   :  { %1867 = vmatprep.subr.mxu0 %v113_v7  ;;  %1889 = vmatpush3.msra.mxu1 %v222_v18  ;;  %p2076_p0 = por %p2075_p13, %p2074_p12 }
  0x4b   :  { %1868 = vmatpush3.msra.mxu0 %v113_v7  ;;  %1890 = vmatprep.subr.mxu1 %v2106_v13 }
  0x4c   :  { %1869 = vmatprep.subr.mxu0 %v112_v8  ;;  %1891 = vmatpush3.msra.mxu1 %v221_v19  ;;  %v213_v19 = vld [vmem:[#allocation5 + $0x10] sm:$0xff]  ;;  %p2077_p1 = pnand %p2076_p0, %p2070_p11 }
  0x4d   :  { %1870 = vmatpush3.msra.mxu0 %v112_v8  ;;  %1892 = vmatprep.subr.mxu1 %v2106_v13  ;;  %v218_v8 = vld [vmem:[#allocation5 + $0x38] sm:$0xff] }
  0x4e   :  { %1871 = vmatprep.subr.mxu0 %v111_v9  ;;  %1893 = vmatpush3.msra.mxu1 %v220_v20  ;;  %v212_v20 = vld [vmem:[#allocation5 + $0x8] sm:$0xff] }
  0x4f   :  { %1872 = vmatpush3.msra.mxu0 %v111_v9  ;;  %1894 = vmatprep.subr.mxu1 %v2106_v13 }
  0x50   :  { %1873 = vmatprep.subr.mxu0 %v110_v10  ;;  %1895 = vmatpush3.msra.mxu1 %v219_v21 }
  0x51   :  { %1874 = vmatpush3.msra.mxu0 %v110_v10  ;;  %1899 = vmatprep.subr.mxu1 %v2106_v13 }
  0x52   :  { %1875 = vmatprep.subr.mxu0 %v109_v11 }
  0x53   :  { %1876 = vmatpush3.msra.mxu0 %v109_v11  ;;  %v217_v11 = vld [vmem:[#allocation5 + $0x30] sm:$0xff] }
  0x54   :  { %1878 = vmatmul.mubr.msk.f32.vlgmr.msra.gmra.mxu0 %vm127_vm0, %v108_v12  ;;  %vm1281_vm0 = vcmask 1041408  }
  0x55   :  { %981 = vmatprep.mubr.f32.mxu0 %v2106_v13 }
 0x114   :  { %v1879_v28 = vpop.f32.mrf.mxu0 }
 0x115   :  { %v206_v29 = vadd.f32 %v1879_v28, %v1692_v25 }
 0x116   :  { %v200_v30 = vpop.f32.mrf.mxu0 }
 0x117   :  { %v210_v31 = vmax.f32 %v206_v29, 0.0  ;;  %v201_v33 = vadd.f32 %v1692_v25, %v200_v30  ;;  %v233_v29 = vld [vmem:[#allocation5 + $0xb0] sm:$0xff] }
 0x119   :  { %v263_v34 = vcombine.high %v210_v31, %v210_v31  ;;  %v209_v35 = vmax.f32 %v201_v33, 0.0  ;;  %v270_v36 = vrot.slane %v210_v31, %v2223_v32  ;;  %v232_v31 = vld [vmem:[#allocation5 + $0xa8] sm:$0xff] }
 0x11b   :  { %v246_v37 = vcombine.high %v209_v35, %v209_v35  ;;  %v253_v38 = vrot.slane %v209_v35, %v2223_v32  ;;  %v277_v39 = vrot.slane %v263_v34, %v2223_v32  ;;  %v278_v44 = vcombine.high %v270_v36, %v270_v36  ;;  %v231_v34 = vld [vmem:[#allocation5 + $0xa0] sm:$0xff] }
 0x11c   :  { %v2262_v57 = vrot.slane %v270_v36, %v2229_v40  ;;  %v2265_v58 = vrot.slane %v270_v36, %v2232_v41  ;;  %v230_v36 = vld [vmem:[#allocation5 + $0x98] sm:$0xff] }
 0x11d   :  { %v260_v42 = vrot.slane %v246_v37, %v2223_v32  ;;  %v261_v43 = vcombine.high %v253_v38, %v253_v38  ;;  %v2236_v45 = vrot.slane %v253_v38, %v2229_v40  ;;  %v378_v46 = vrot.slane %v253_v38, %v2232_v41 }
 0x11e   :  { %v2246_v51 = vcombine.high %v277_v39, %v277_v39  ;;  %v2272_v61 = vrot.slane %v278_v44, %v2232_v41  ;;  %v2279_v0 = vrot.slane %v278_v44, %v2229_v40  ;;  %v2282_v1 = vrot.slane %v277_v39, %v2232_v41 }
 0x11f   :  { %v262_v47 = vcombine.high %v260_v42, %v260_v42  ;;  %v287_v48 = vrot.slane %v261_v43, %v2229_v40  ;;  %v2241_v49 = vrot.slane %v260_v42, %v2229_v40  ;;  %v2244_v50 = vrot.slane %v261_v43, %v2232_v41  ;;  %v228_v43 = vld [vmem:[#allocation5 + $0x88] sm:$0xff] }
 0x120   :  { %v2249_v52 = vrot.slane %v260_v42, %v2232_v41  ;;  %v2290_v4 = vrot.slane %v2246_v51, %v2232_v41  ;;  %v2299_v9 = vrot.slane %v277_v39, %v2229_v40  ;;  %v229_v39 = vld [vmem:[#allocation5 + $0x90] sm:$0xff] }
 0x121   :  { %v2252_v53 = vrot.slane %v262_v47, %v2229_v40  ;;  %v309_v54 = vsel %vm308_vm2, %v287_v48, %v2236_v45  ;;  %v2257_v55 = vrot.slane %v262_v47, %v2232_v41  ;;  %v379_v56 = vsel %vm351_vm4, %v2244_v50, %v378_v46 }
 0x122   :  { %v311_v59 = vsel %vm310_vm3, %v2241_v49, %v309_v54  ;;  %v380_v60 = vsel %vm308_vm2, %v2249_v52, %v379_v56  ;;  %v538_v23 = vsel %vm351_vm4, %v287_v48, %v2236_v45  ;;  %v352_v30 = vsel %vm351_vm4, %v2249_v52, %v2244_v50  ;;  %v227_v45 = vld [vmem:[#allocation5 + $0x80] sm:$0xff]  ;;  %v241_v52 = vld [vmem:[#allocation5 + $0xf0] sm:$0xff]  ;;  %v238_v56 = vld [vmem:[#allocation5 + $0xd8] sm:$0xff] }
 0x123   :  { %v313_v62 = vsel %vm312_vm5, %v2252_v53, %v311_v59  ;;  %v381_v63 = vsel %vm310_vm3, %v2257_v55, %v380_v60  ;;  %v539_v28 = vsel %vm308_vm2, %v2241_v49, %v538_v23  ;;  %v353_v35 = vsel %vm308_vm2, %v2257_v55, %v352_v30  ;;  %v242_v49 = vld [vmem:[#allocation5 + $0xf8] sm:$0xff]  ;;  %v239_v55 = vld [vmem:[#allocation5 + $0xe0] sm:$0xff]  ;;  %v236_v59 = vld [vmem:[#allocation5 + $0xc8] sm:$0xff] }
 0x124   :  { %v315_v2 = vsel %vm314_vm6, %v2262_v57, %v313_v62  ;;  %v382_v3 = vsel %vm312_vm5, %v2265_v58, %v381_v63  ;;  %v540_v33 = vsel %vm310_vm3, %v2252_v53, %v539_v28  ;;  %v354_v38 = vsel %vm310_vm3, %v2265_v58, %v353_v35  ;;  %v237_v58 = vld [vmem:[#allocation5 + $0xd0] sm:$0xff]  ;;  %v751_v23 = vld [vmem:[#allocation7 + $0x188] sm:$0xff]  ;;  %v725_v28 = vld [vmem:[#allocation7 + $0xb8] sm:$0xff] }
 0x125   :  { %v383_v5 = vsel %vm314_vm6, %v2272_v61, %v382_v3  ;;  %v317_v6 = vsel %vm316_vm7, %v2279_v0, %v315_v2  ;;  %v541_v37 = vsel %vm312_vm5, %v2262_v57, %v540_v33  ;;  %v355_v44 = vsel %vm312_vm5, %v2272_v61, %v354_v38  ;;  %v235_v61 = vld [vmem:[#allocation5 + $0xc0] sm:$0xff]  ;;  %v763_v2 = vld [vmem:[#allocation7 + $0x1e8] sm:$0xff]  ;;  %v724_v30 = vld [vmem:[#allocation7 + $0xb0] sm:$0xff] }
 0x126   :  { %v384_v7 = vsel %vm316_vm7, %v2282_v1, %v383_v5  ;;  %v319_v12 = vsel %vm318_vm8, %v2299_v9, %v317_v6  ;;  %v542_v42 = vsel %vm314_vm6, %v2279_v0, %v541_v37  ;;  %v537_v47 = vrot.slane %v2246_v51, %v2229_v40  ;;  %v240_v51 = vld [vmem:[#allocation5 + $0xe8] sm:$0xff]  ;;  %v765_v0 = vld [vmem:[#allocation7 + $0x1f8] sm:$0xff]  ;;  %v762_v3 = vld [vmem:[#allocation7 + $0x1e0] sm:$0xff] }
 0x127   :  { %v385_v10 = vsel %vm318_vm8, %v2290_v4, %v384_v7  ;;  %v322_v15 = vsel %vm321_vm10, 0.0, %v319_v12  ;;  %v543_v46 = vsel %vm316_vm7, %v2299_v9, %v542_v42  ;;  %v356_v48 = vsel %vm314_vm6, %v2282_v1, %v355_v44  ;;  %917 = vmatprep.subr.mxu0 %v765_v0  ;;  %v764_v1 = vld [vmem:[#allocation7 + $0x1f0] sm:$0xff]  ;;  %v759_v6 = vld [vmem:[#allocation7 + $0x1c8] sm:$0xff]  ;;  %v758_v7 = vld [vmem:[#allocation7 + $0x1c0] sm:$0xff] }
 0x128   :  { %1897 = vmatmul.mubr.msk.f32.vlgmr.msra.gmra.mxu1 %vm386_vm9, %v385_v10  ;;  %v365_v18 = vcombine.high %v322_v15, %v322_v15  ;;  %v367_v24 = vsel %vm363_vm11, 0.0, %v322_v15  ;;  %v544_v50 = vsel %vm318_vm8, %v537_v47, %v543_v46  ;;  %v357_v53 = vsel %vm316_vm7, %v2290_v4, %v356_v48  ;;  %918 = vmatpush1.msra.mxu0 %v764_v1  ;;  %v761_v4 = vld [vmem:[#allocation7 + $0x1d8] sm:$0xff]  ;;  %v760_v5 = vld [vmem:[#allocation7 + $0x1d0] sm:$0xff]  ;;  %v731_v12 = vld [vmem:[#allocation7 + $0xe8] sm:$0xff] }
 0x129   :  { %1900 = vmatpush3.msra.mxu1 %v218_v8  ;;  %1915 = vmatprep.mubr.msk.f32.mxu1 %vm2107_vm1, %v2106_v13  ;;  %v360_v54 = vsel %vm359_vm12, %v357_v53, 0.0  ;;  %v757_v8 = vld [vmem:[#allocation7 + $0x1b8] sm:$0xff]  ;;  %v732_v10 = vld [vmem:[#allocation7 + $0xf0] sm:$0xff]  ;;  %v730_v15 = vld [vmem:[#allocation7 + $0xe0] sm:$0xff] }
 0x12a   :  { %1901 = vmatprep.subr.mxu1 %v2106_v13  ;;  %v368_v21 = vsel %vm363_vm11, 0.0, %v365_v18  ;;  %v371_v57 = vcombine.high %v360_v54, %v360_v54  ;;  %v373_v62 = vsel %vm369_vm13, 0.0, %v360_v54  ;;  %919 = vmatprep.subr.mxu0 %v763_v2  ;;  %v733_v9 = vld [vmem:[#allocation7 + $0xf8] sm:$0xff]  ;;  %v728_v18 = vld [vmem:[#allocation7 + $0xd0] sm:$0xff]  ;;  %v723_v33 = vld [vmem:[#allocation7 + $0xa8] sm:$0xff] }
 0x12b   :  { %1902 = vmatpush3.msra.mxu1 %v217_v11  ;;  %v461_v25 = vcombine.low %v367_v24, %v368_v21  ;;  %920 = vmatpush1.msra.mxu0 %v762_v3  ;;  %v756_v11 = vld [vmem:[#allocation7 + $0x1b0] sm:$0xff]  ;;  %v750_v24 = vld [vmem:[#allocation7 + $0x180] sm:$0xff]  ;;  %v721_v37 = vld [vmem:[#allocation7 + $0x98] sm:$0xff] }
 0x12c   :  { %1903 = vmatprep.subr.mxu1 %v2106_v13  ;;  %v374_v60 = vsel %vm369_vm13, 0.0, %v371_v57  ;;  %921 = vmatprep.subr.mxu0 %v761_v4  ;;  %v752_v21 = vld [vmem:[#allocation7 + $0x190] sm:$0xff]  ;;  %v722_v35 = vld [vmem:[#allocation7 + $0xa0] sm:$0xff]  ;;  %v743_v38 = vld [vmem:[#allocation7 + $0x148] sm:$0xff] }
 0x12d   :  { %1904 = vmatpush3.msra.mxu1 %v216_v14  ;;  %v620_v63 = vcombine.low %v373_v62, %v374_v60  ;;  %922 = vmatpush1.msra.mxu0 %v760_v5  ;;  %v755_v14 = vld [vmem:[#allocation7 + $0x1a8] sm:$0xff]  ;;  %v742_v42 = vld [vmem:[#allocation7 + $0x140] sm:$0xff]  ;;  %v741_v44 = vld [vmem:[#allocation7 + $0x138] sm:$0xff] }
 0x12e   :  { %1905 = vmatprep.subr.mxu1 %v2106_v13  ;;  %923 = vmatprep.subr.mxu0 %v759_v6  ;;  %v740_v46 = vld [vmem:[#allocation7 + $0x130] sm:$0xff]  ;;  %v717_v47 = vld [vmem:[#allocation7 + $0x78] sm:$0xff]  ;;  %v739_v48 = vld [vmem:[#allocation7 + $0x128] sm:$0xff] }
 0x12f   :  { %1906 = vmatpush3.msra.mxu1 %v215_v16  ;;  %924 = vmatpush1.msra.mxu0 %v758_v7  ;;  %v729_v16 = vld [vmem:[#allocation7 + $0xd8] sm:$0xff]  ;;  %v736_v54 = vld [vmem:[#allocation7 + $0x110] sm:$0xff]  ;;  %v710_v60 = vld [vmem:[#allocation7 + $0x40] sm:$0xff] }
 0x130   :  { %1907 = vmatprep.subr.mxu1 %v2106_v13  ;;  %925 = vmatprep.subr.mxu0 %v757_v8  ;;  %v737_v53 = vld [vmem:[#allocation7 + $0x118] sm:$0xff]  ;;  %v712_v57 = vld [vmem:[#allocation7 + $0x50] sm:$0xff]  ;;  %v707_v0 = vld [vmem:[#allocation7 + $0x28] sm:$0xff] }
 0x131   :  { %1908 = vmatpush3.msra.mxu1 %v214_v17  ;;  %v754_v17 = vld [vmem:[#allocation7 + $0x1a0] sm:$0xff]  ;;  %926 = vmatpush1.msra.mxu0 %v756_v11  ;;  %v709_v62 = vld [vmem:[#allocation7 + $0x38] sm:$0xff]  ;;  %v704_v3 = vld [vmem:[#allocation7 + $0x10] sm:$0xff] }
 0x132   :  { %1909 = vmatprep.subr.mxu1 %v2106_v13  ;;  %927 = vmatprep.subr.mxu0 %v755_v14  ;;  %v706_v1 = vld [vmem:[#allocation7 + $0x20] sm:$0xff]  ;;  %v705_v2 = vld [vmem:[#allocation7 + $0x18] sm:$0xff]  ;;  %v703_v4 = vld [vmem:[#allocation7 + $0x8] sm:$0xff] }
 0x133   :  { %1910 = vmatpush3.msra.mxu1 %v213_v19  ;;  %v753_v19 = vld [vmem:[#allocation7 + $0x198] sm:$0xff]  ;;  %928 = vmatpush1.msra.mxu0 %v754_v17  ;;  %v702_v5 = vld [vmem:[#allocation7] sm:$0xff] }
 0x134   :  { %1911 = vmatprep.subr.mxu1 %v2106_v13  ;;  %929 = vmatprep.subr.mxu0 %v753_v19  ;;  %v829_v6 = vld [vmem:[#allocation7 + $0x3f8] sm:$0xff] }
 0x135   :  { %1912 = vmatpush3.msra.mxu1 %v212_v20  ;;  %v727_v20 = vld [vmem:[#allocation7 + $0xc8] sm:$0xff]  ;;  %930 = vmatpush1.msra.mxu0 %v752_v21 }
 0x136   :  { %1913 = vmatprep.subr.mxu1 %v2106_v13  ;;  %931 = vmatprep.subr.mxu0 %v751_v23 }
 0x137   :  { %1914 = vmatpush3.msra.mxu1 %v211_v22  ;;  %v726_v22 = vld [vmem:[#allocation7 + $0xc0] sm:$0xff]  ;;  %932 = vmatpush1.msra.mxu0 %v750_v24 }
 0x138   :  { %1916 = vmatmul.mubr.msk.f32.vlgmr.msra.gmra.mxu1 %vm386_vm9, %v461_v25  ;;  %1918 = vmatprep.subr.mxu1 %v2106_v13  ;;  %v749_v25 = vld [vmem:[#allocation7 + $0x178] sm:$0xff] }
 0x139   :  { %1919 = vmatpush3.msra.mxu1 %v234_v26  ;;  %1934 = vmatprep.mubr.msk.f32.mxu1 %vm2107_vm1, %v2106_v13  ;;  %v748_v26 = vld [vmem:[#allocation7 + $0x170] sm:$0xff] }
 0x13a   :  { %1920 = vmatprep.subr.mxu1 %v2106_v13  ;;  %933 = vmatprep.subr.mxu0 %v749_v25 }
 0x13b   :  { %1921 = vmatpush3.msra.mxu1 %v233_v29  ;;  %934 = vmatpush1.msra.mxu0 %v748_v26  ;;  %v747_v29 = vld [vmem:[#allocation7 + $0x168] sm:$0xff] }
 0x13c   :  { %1922 = vmatprep.subr.mxu1 %v2106_v13  ;;  %935 = vmatprep.subr.mxu0 %v747_v29 }
 0x13d   :  { %1923 = vmatpush3.msra.mxu1 %v232_v31  ;;  %v746_v31 = vld [vmem:[#allocation7 + $0x160] sm:$0xff] }
 0x13e   :  { %1924 = vmatprep.subr.mxu1 %v2106_v13  ;;  %936 = vmatpush1.msra.mxu0 %v746_v31 }
 0x13f   :  { %1925 = vmatpush3.msra.mxu1 %v231_v34  ;;  %v745_v34 = vld [vmem:[#allocation7 + $0x158] sm:$0xff] }
 0x140   :  { %1926 = vmatprep.subr.mxu1 %v2106_v13  ;;  %937 = vmatprep.subr.mxu0 %v745_v34 }
 0x141   :  { %1927 = vmatpush3.msra.mxu1 %v230_v36  ;;  %v744_v36 = vld [vmem:[#allocation7 + $0x150] sm:$0xff] }
 0x142   :  { %1928 = vmatprep.subr.mxu1 %v2106_v13  ;;  %938 = vmatpush1.msra.mxu0 %v744_v36 }
 0x143   :  { %1929 = vmatpush3.msra.mxu1 %v229_v39  ;;  %v720_v39 = vld [vmem:[#allocation7 + $0x90] sm:$0xff]  ;;  %939 = vmatprep.subr.mxu0 %v743_v38 }
 0x144   :  { %1930 = vmatprep.subr.mxu1 %v2106_v13  ;;  %940 = vmatpush1.msra.mxu0 %v742_v42 }
 0x145   :  { %1931 = vmatpush3.msra.mxu1 %v228_v43  ;;  %v719_v43 = vld [vmem:[#allocation7 + $0x88] sm:$0xff]  ;;  %941 = vmatprep.subr.mxu0 %v741_v44 }
 0x146   :  { %1932 = vmatprep.subr.mxu1 %v2106_v13  ;;  %942 = vmatpush1.msra.mxu0 %v740_v46  ;;  %v795_v44 = vld [vmem:[#allocation7 + $0x2e8] sm:$0xff]  ;;  %v794_v46 = vld [vmem:[#allocation7 + $0x2e0] sm:$0xff] }
 0x147   :  { %1933 = vmatpush3.msra.mxu1 %v227_v45  ;;  %v718_v45 = vld [vmem:[#allocation7 + $0x80] sm:$0xff]  ;;  %943 = vmatprep.subr.mxu0 %v739_v48  ;;  %v793_v48 = vld [vmem:[#allocation7 + $0x2d8] sm:$0xff] }
 0x148   :  { %1935 = vmatmul.mubr.msk.f32.vlgmr.msra.gmra.mxu1 %vm386_vm9, %v544_v50  ;;  %1937 = vmatprep.subr.mxu1 %v2106_v13  ;;  %v738_v50 = vld [vmem:[#allocation7 + $0x120] sm:$0xff] }
 0x149   :  { %1938 = vmatpush3.msra.mxu1 %v242_v49  ;;  %1953 = vmatprep.mubr.msk.f32.mxu1 %vm2107_vm1, %v2106_v13  ;;  %v716_v49 = vld [vmem:[#allocation7 + $0x70] sm:$0xff] }
 0x14a   :  { %1939 = vmatprep.subr.mxu1 %v2106_v13  ;;  %944 = vmatpush1.msra.mxu0 %v738_v50 }
 0x14b   :  { %1940 = vmatpush3.msra.mxu1 %v241_v52  ;;  %v715_v52 = vld [vmem:[#allocation7 + $0x68] sm:$0xff]  ;;  %945 = vmatprep.subr.mxu0 %v737_v53  ;;  %v790_v53 = vld [vmem:[#allocation7 + $0x2c0] sm:$0xff] }
 0x14c   :  { %1941 = vmatprep.subr.mxu1 %v2106_v13  ;;  %946 = vmatpush1.msra.mxu0 %v736_v54 }
 0x14d   :  { %1942 = vmatpush3.msra.mxu1 %v240_v51  ;;  %v714_v51 = vld [vmem:[#allocation7 + $0x60] sm:$0xff] }
 0x14e   :  { %1943 = vmatprep.subr.mxu1 %v2106_v13 }
 0x14f   :  { %1944 = vmatpush3.msra.mxu1 %v239_v55  ;;  %v713_v55 = vld [vmem:[#allocation7 + $0x58] sm:$0xff] }
 0x150   :  { %1945 = vmatprep.subr.mxu1 %v2106_v13 }
 0x151   :  { %1946 = vmatpush3.msra.mxu1 %v238_v56  ;;  %v735_v56 = vld [vmem:[#allocation7 + $0x108] sm:$0xff] }
 0x152   :  { %1947 = vmatprep.subr.mxu1 %v2106_v13  ;;  %947 = vmatprep.subr.mxu0 %v735_v56 }
 0x153   :  { %1948 = vmatpush3.msra.mxu1 %v237_v58  ;;  %v734_v58 = vld [vmem:[#allocation7 + $0x100] sm:$0xff] }
 0x154   :  { %1949 = vmatprep.subr.mxu1 %v2106_v13  ;;  %948 = vmatpush1.msra.mxu0 %v734_v58 }
 0x155   :  { %1950 = vmatpush3.msra.mxu1 %v236_v59  ;;  %v711_v59 = vld [vmem:[#allocation7 + $0x48] sm:$0xff] }
 0x156   :  { %1951 = vmatprep.subr.mxu1 %v2106_v13 }
 0x157   :  { %1952 = vmatpush3.msra.mxu1 %v235_v61  ;;  %v797_v61 = vld [vmem:[#allocation7 + $0x2f8] sm:$0xff] }
 0x158   :  { %1954 = vmatmul.mubr.msk.f32.vlgmr.msra.gmra.mxu1 %vm386_vm9, %v620_v63  ;;  %999 = vmatprep.subr.mxu1 %v733_v9  ;;  %v708_v63 = vld [vmem:[#allocation7 + $0x30] sm:$0xff] }
 0x159   :  { %1063 = vmatprep.mubr.f32.mxu1 %v2106_v13  ;;  %1000 = vmatpush1.msra.mxu1 %v732_v10 }
 0x15a   :  { %1001 = vmatprep.subr.mxu1 %v731_v12  ;;  %1078 = vmatprep.subr.mxu0 %v797_v61  ;;  %v786_v61 = vld [vmem:[#allocation7 + $0x2a0] sm:$0xff] }
 0x15b   :  { %1002 = vmatpush1.msra.mxu1 %v730_v15 }
 0x15c   :  { %1003 = vmatprep.subr.mxu1 %v729_v16  ;;  %v1699_v16 = vld [vmem:[%s2579_s4] ss:$0 sm:$0xff] }
 0x15d   :  { %1004 = vmatpush1.msra.mxu1 %v728_v18 }
 0x15e   :  { %1005 = vmatprep.subr.mxu1 %v727_v20 }
 0x15f   :  { %1006 = vmatpush1.msra.mxu1 %v726_v22 }
 0x160   :  { %1007 = vmatprep.subr.mxu1 %v725_v28 }
 0x161   :  { %1008 = vmatpush1.msra.mxu1 %v724_v30 }
 0x162   :  { %1009 = vmatprep.subr.mxu1 %v723_v33 }
 0x163   :  { %1010 = vmatpush1.msra.mxu1 %v722_v35 }
 0x164   :  { %1011 = vmatprep.subr.mxu1 %v721_v37 }
 0x165   :  { %1012 = vmatpush1.msra.mxu1 %v720_v39  ;;  %v796_v39 = vld [vmem:[#allocation7 + $0x2f0] sm:$0xff] }
 0x166   :  { %1013 = vmatprep.subr.mxu1 %v719_v43 }
 0x167   :  { %1014 = vmatpush1.msra.mxu1 %v718_v45 }
 0x168   :  { %1015 = vmatprep.subr.mxu1 %v717_v47 }
 0x169   :  { %1016 = vmatpush1.msra.mxu1 %v716_v49  ;;  %v792_v49 = vld [vmem:[#allocation7 + $0x2d0] sm:$0xff] }
 0x16a   :  { %1017 = vmatprep.subr.mxu1 %v715_v52  ;;  %v791_v52 = vld [vmem:[#allocation7 + $0x2c8] sm:$0xff] }
 0x16b   :  { %1018 = vmatpush1.msra.mxu1 %v714_v51 }
 0x16c   :  { %1019 = vmatprep.subr.mxu1 %v713_v55  ;;  %v789_v55 = vld [vmem:[#allocation7 + $0x2b8] sm:$0xff] }
 0x16d   :  { %1020 = vmatpush1.msra.mxu1 %v712_v57  ;;  %v788_v57 = vld [vmem:[#allocation7 + $0x2b0] sm:$0xff] }
 0x16e   :  { %1021 = vmatprep.subr.mxu1 %v711_v59  ;;  %v787_v59 = vld [vmem:[#allocation7 + $0x2a8] sm:$0xff] }
 0x16f   :  { %1022 = vmatpush1.msra.mxu1 %v710_v60  ;;  %v828_v60 = vld [vmem:[#allocation7 + $0x3f0] sm:$0xff] }
 0x170   :  { %1023 = vmatprep.subr.mxu1 %v709_v62  ;;  %v827_v62 = vld [vmem:[#allocation7 + $0x3e8] sm:$0xff] }
 0x171   :  { %1024 = vmatpush1.msra.mxu1 %v708_v63  ;;  %v785_v63 = vld [vmem:[#allocation7 + $0x298] sm:$0xff] }
 0x172   :  { %1025 = vmatprep.subr.mxu1 %v707_v0  ;;  %v826_v0 = vld [vmem:[#allocation7 + $0x3e0] sm:$0xff] }
 0x173   :  { %1026 = vmatpush1.msra.mxu1 %v706_v1  ;;  %v784_v1 = vld [vmem:[#allocation7 + $0x290] sm:$0xff] }
 0x174   :  { %1027 = vmatprep.subr.mxu1 %v705_v2  ;;  %v825_v2 = vld [vmem:[#allocation7 + $0x3d8] sm:$0xff] }
 0x175   :  { %1028 = vmatpush1.msra.mxu1 %v704_v3  ;;  %v783_v3 = vld [vmem:[#allocation7 + $0x288] sm:$0xff] }
 0x176   :  { %1029 = vmatprep.subr.mxu1 %v703_v4  ;;  %v824_v4 = vld [vmem:[#allocation7 + $0x3d0] sm:$0xff] }
 0x177   :  { %1030 = vmatpush1.msra.mxu1 %v702_v5  ;;  %v782_v5 = vld [vmem:[#allocation7 + $0x280] sm:$0xff] }
 0x178   :  { %1162 = vmatprep.subr.mxu1 %v829_v6  ;;  %v823_v6 = vld [vmem:[#allocation7 + $0x3c8] sm:$0xff] }
 0x1e8   :  { %v455_v7 = vpop.f32.mrf.mxu1 }
 0x1ea   :  { %v1898_v8 = vpop.f32.mrf.mxu1 }
 0x1eb   :  { %v822_v8 = vld [vmem:[#allocation7 + $0x3c0] sm:$0xff] }
 0x1f8   :  { %v530_v9 = vpop.f32.mrf.mxu1 }
 0x1f9   :  { %v531_v14 = vadd.f32 %v530_v9, %v455_v7  ;;  %v781_v7 = vld [vmem:[#allocation7 + $0x278] sm:$0xff]  ;;  %v780_v9 = vld [vmem:[#allocation7 + $0x270] sm:$0xff] }
 0x1fa   :  { %v1917_v10 = vpop.f32.mrf.mxu1 }
 0x1fb   :  { %v821_v10 = vld [vmem:[#allocation7 + $0x3b8] sm:$0xff] }
 0x208   :  { %v613_v11 = vpop.f32.mrf.mxu1 }
 0x209   :  { %v617_v15 = vadd.f32 %v613_v11, %v531_v14  ;;  %v820_v14 = vld [vmem:[#allocation7 + $0x3b0] sm:$0xff] }
 0x20a   :  { %v1936_v12 = vpop.f32.mrf.mxu1 }
 0x20b   :  { %v779_v12 = vld [vmem:[#allocation7 + $0x268] sm:$0xff] }
 0x218   :  { %v689_v17 = vpop.f32.mrf.mxu1 }
 0x219   :  { %v693_v18 = vadd.f32 %v689_v17, %v617_v15  ;;  %v778_v15 = vld [vmem:[#allocation7 + $0x260] sm:$0xff]  ;;  %v777_v17 = vld [vmem:[#allocation7 + $0x258] sm:$0xff] }
 0x21a   :  { %v1955_v19 = vpop.f32.mrf.mxu1 }
 0x21b   :  { %v700_v20 = vadd.f32 %v1699_v16, %v693_v18  ;;  %v819_v16 = vld [vmem:[#allocation7 + $0x3a8] sm:$0xff]  ;;  %v818_v18 = vld [vmem:[#allocation7 + $0x3a0] sm:$0xff] }
 0x21d   :  { %v701_v21 = vmax.f32 %v700_v20, 0.0  ;;  %v776_v20 = vld [vmem:[#allocation7 + $0x250] sm:$0xff] }
 0x21f   :  { %v832_v22 = vcombine.high %v701_v21, %v701_v21  ;;  %v839_v23 = vrot.slane %v701_v21, %v2223_v32  ;;  %v817_v21 = vld [vmem:[#allocation7 + $0x398] sm:$0xff] }
 0x221   :  { %v846_v24 = vrot.slane %v832_v22, %v2223_v32  ;;  %v847_v25 = vcombine.high %v839_v23, %v839_v23  ;;  %v2380_v26 = vrot.slane %v839_v23, %v2229_v40  ;;  %v912_v28 = vrot.slane %v839_v23, %v2232_v41  ;;  %v775_v22 = vld [vmem:[#allocation7 + $0x248] sm:$0xff]  ;;  %v816_v23 = vld [vmem:[#allocation7 + $0x390] sm:$0xff] }
 0x223   :  { %v2384_v29 = vrot.slane %v847_v25, %v2229_v40  ;;  %v2387_v30 = vrot.slane %v846_v24, %v2229_v40  ;;  %v2390_v31 = vrot.slane %v847_v25, %v2232_v41  ;;  %v2392_v33 = vcombine.high %v846_v24, %v846_v24  ;;  %v815_v25 = vld [vmem:[#allocation7 + $0x388] sm:$0xff] }
 0x224   :  { %v872_v34 = vrot.slane %v846_v24, %v2232_v41  ;;  %v774_v24 = vld [vmem:[#allocation7 + $0x240] sm:$0xff] }
 0x225   :  { %v861_v35 = vsel %vm308_vm2, %v2384_v29, %v2380_v26  ;;  %v2400_v36 = vrot.slane %v2392_v33, %v2232_v41  ;;  %v913_v37 = vsel %vm351_vm4, %v2390_v31, %v912_v28  ;;  %v773_v28 = vld [vmem:[#allocation7 + $0x238] sm:$0xff] }
 0x226   :  { %v914_v38 = vsel %vm308_vm2, %v872_v34, %v913_v37  ;;  %v862_v42 = vsel %vm310_vm3, %v2387_v30, %v861_v35  ;;  %v877_v11 = vsel %vm351_vm4, %v872_v34, %v2390_v31  ;;  %v814_v31 = vld [vmem:[#allocation7 + $0x380] sm:$0xff]  ;;  %v772_v35 = vld [vmem:[#allocation7 + $0x230] sm:$0xff]  ;;  %v771_v37 = vld [vmem:[#allocation7 + $0x228] sm:$0xff] }
 0x227   :  { %v915_v43 = vsel %vm310_vm3, %v2400_v36, %v914_v38  ;;  %v864_v45 = vsel %vm321_vm10, 0.0, %v862_v42  ;;  %v878_v19 = vsel %vm308_vm2, %v2400_v36, %v877_v11  ;;  %v813_v36 = vld [vmem:[#allocation7 + $0x378] sm:$0xff]  ;;  %v812_v38 = vld [vmem:[#allocation7 + $0x370] sm:$0xff]  ;;  %v811_v42 = vld [vmem:[#allocation7 + $0x368] sm:$0xff] }
 0x228   :  { %982 = vmatmul.mubr.f32.vlgmr.msra.gmra.mxu0 %v915_v43  ;;  %v889_v47 = vrot.slane %v864_v45, %v2223_v32  ;;  %v881_v34 = vsel %vm880_vm14, %v878_v19, 0.0  ;;  %v810_v45 = vld [vmem:[#allocation7 + $0x360] sm:$0xff]  ;;  %v1446_v11 = vld [vmem:[#allocation10 + $0xd0] sm:$0xff] }
 0x229   :  { %1079 = vmatpush1.msra.mxu0 %v796_v39  ;;  %1142 = vmatprep.mubr.f32.mxu0 %v2106_v13  ;;  %v770_v39 = vld [vmem:[#allocation7 + $0x220] sm:$0xff]  ;;  %v903_v43 = vrot.slane %v881_v34, %v2223_v32 }
 0x22a   :  { %1080 = vmatprep.subr.mxu0 %v795_v44  ;;  %v890_v50 = vcombine.high %v889_v47, %v889_v47  ;;  %v893_v51 = vsel %vm363_vm11, 0.0, %v889_v47  ;;  %v769_v44 = vld [vmem:[#allocation7 + $0x218] sm:$0xff]  ;;  %v768_v47 = vld [vmem:[#allocation7 + $0x210] sm:$0xff]  ;;  %v1428_v19 = vld [vmem:[#allocation10 + $0x40] sm:$0xff] }
 0x22b   :  { %1081 = vmatpush1.msra.mxu0 %v794_v46  ;;  %v1074_v46 = vsel %vm351_vm4, %v2384_v29, %v2380_v26  ;;  %v806_v26 = vld [vmem:[#allocation7 + $0x340] sm:$0xff]  ;;  %v805_v29 = vld [vmem:[#allocation7 + $0x338] sm:$0xff] }
 0x22c   :  { %1082 = vmatprep.subr.mxu0 %v793_v48  ;;  %v894_v54 = vsel %vm363_vm11, 0.0, %v890_v50  ;;  %v809_v48 = vld [vmem:[#allocation7 + $0x358] sm:$0xff]  ;;  %v808_v50 = vld [vmem:[#allocation7 + $0x350] sm:$0xff]  ;;  %v1338_v34 = vld [vmem:[#allocation8 + $0xe0] sm:$0xff] }
 0x22d   :  { %1083 = vmatpush1.msra.mxu0 %v792_v49  ;;  %v990_v56 = vcombine.low %v893_v51, %v894_v54  ;;  %v767_v49 = vld [vmem:[#allocation7 + $0x208] sm:$0xff]  ;;  %v1075_v54 = vsel %vm308_vm2, %v2387_v30, %v1074_v46  ;;  %v802_v30 = vld [vmem:[#allocation7 + $0x320] sm:$0xff]  ;;  %v1320_v46 = vld [vmem:[#allocation8 + $0x50] sm:$0xff] }
 0x22e   :  { %1084 = vmatprep.subr.mxu0 %v791_v52  ;;  %v1073_v52 = vrot.slane %v2392_v33, %v2229_v40  ;;  %v807_v51 = vld [vmem:[#allocation7 + $0x348] sm:$0xff] }
 0x22f   :  { %1085 = vmatpush1.msra.mxu0 %v790_v53  ;;  %v997_v58 = vrot.slane %v990_v56, %v2223_v32  ;;  %v766_v53 = vld [vmem:[#allocation7 + $0x200] sm:$0xff]  ;;  %v803_v33 = vld [vmem:[#allocation7 + $0x328] sm:$0xff] }
 0x230   :  { %1086 = vmatprep.subr.mxu0 %v789_v55  ;;  %v904_v55 = vcombine.high %v903_v43, %v903_v43  ;;  %v1076_v56 = vsel %vm310_vm3, %v1073_v52, %v1075_v54  ;;  %v1422_v52 = vld [vmem:[#allocation10 + $0x10] sm:$0xff]  ;;  %v1318_v54 = vld [vmem:[#allocation8 + $0x40] sm:$0xff] }
 0x231   :  { %1087 = vmatpush1.msra.mxu0 %v788_v57  ;;  %1064 = vmatmul.mubr.f32.vlgmr.msra.gmra.mxu1 %v997_v58  ;;  %v804_v57 = vld [vmem:[#allocation7 + $0x330] sm:$0xff] }
 0x232   :  { %1088 = vmatprep.subr.mxu0 %v787_v59  ;;  %1163 = vmatpush1.msra.mxu1 %v828_v60  ;;  %v908_v58 = vsel %vm895_vm15, 0.0, %v904_v55  ;;  %v801_v59 = vld [vmem:[#allocation7 + $0x318] sm:$0xff]  ;;  %v907_v60 = vsel %vm895_vm15, 0.0, %v903_v43  ;;  %v1424_v43 = vld [vmem:[#allocation10 + $0x20] sm:$0xff]  ;;  %v1421_v55 = vld [vmem:[#allocation10 + $0x8] sm:$0xff] }
 0x233   :  { %1089 = vmatpush1.msra.mxu0 %v786_v61  ;;  %1164 = vmatprep.subr.mxu1 %v827_v62  ;;  %v800_v61 = vld [vmem:[#allocation7 + $0x310] sm:$0xff]  ;;  %v1153_v62 = vcombine.low %v907_v60, %v908_v58  ;;  %v1330_v60 = vld [vmem:[#allocation8 + $0xa0] sm:$0xff] }
 0x234   :  { %1090 = vmatprep.subr.mxu0 %v785_v63  ;;  %1165 = vmatpush1.msra.mxu1 %v826_v0  ;;  %v799_v63 = vld [vmem:[#allocation7 + $0x308] sm:$0xff]  ;;  %v798_v0 = vld [vmem:[#allocation7 + $0x300] sm:$0xff]  ;;  %v1316_v58 = vld [vmem:[#allocation8 + $0x30] sm:$0xff] }
 0x235   :  { %1091 = vmatpush1.msra.mxu0 %v784_v1  ;;  %1166 = vmatprep.subr.mxu1 %v825_v2  ;;  %v1160_v1 = vrot.slane %v1153_v62, %v2223_v32  ;;  %v1451_v2 = vld [vmem:[#allocation10 + $0xf8] sm:$0xff] }
 0x236   :  { %1092 = vmatprep.subr.mxu0 %v783_v3  ;;  %1167 = vmatpush1.msra.mxu1 %v824_v4  ;;  %v1435_v3 = vld [vmem:[#allocation10 + $0x78] sm:$0xff]  ;;  %v1450_v4 = vld [vmem:[#allocation10 + $0xf0] sm:$0xff] }
 0x237   :  { %1093 = vmatpush1.msra.mxu0 %v782_v5  ;;  %1168 = vmatprep.subr.mxu1 %v823_v6  ;;  %v1449_v5 = vld [vmem:[#allocation10 + $0xe8] sm:$0xff]  ;;  %v1329_v62 = vld [vmem:[#allocation8 + $0x98] sm:$0xff] }
 0x238   :  { %1094 = vmatprep.subr.mxu0 %v781_v7  ;;  %1169 = vmatpush1.msra.mxu1 %v822_v8  ;;  %v1433_v6 = vld [vmem:[#allocation10 + $0x68] sm:$0xff]  ;;  %v1448_v7 = vld [vmem:[#allocation10 + $0xe0] sm:$0xff] }
 0x239   :  { %1095 = vmatpush1.msra.mxu0 %v780_v9  ;;  %1170 = vmatprep.subr.mxu1 %v821_v10  ;;  %v1432_v8 = vld [vmem:[#allocation10 + $0x60] sm:$0xff]  ;;  %v1447_v9 = vld [vmem:[#allocation10 + $0xd8] sm:$0xff] }
 0x23a   :  { %1096 = vmatprep.subr.mxu0 %v779_v12  ;;  %1171 = vmatpush1.msra.mxu1 %v820_v14  ;;  %v1431_v10 = vld [vmem:[#allocation10 + $0x58] sm:$0xff]  ;;  %v1430_v12 = vld [vmem:[#allocation10 + $0x50] sm:$0xff]  ;;  %v1445_v14 = vld [vmem:[#allocation10 + $0xc8] sm:$0xff] }
 0x23b   :  { %1097 = vmatpush1.msra.mxu0 %v778_v15  ;;  %1172 = vmatprep.subr.mxu1 %v819_v16  ;;  %v1429_v15 = vld [vmem:[#allocation10 + $0x48] sm:$0xff]  ;;  %v1341_v16 = vld [vmem:[#allocation8 + $0xf8] sm:$0xff] }
 0x23c   :  { %1098 = vmatprep.subr.mxu0 %v777_v17  ;;  %1173 = vmatpush1.msra.mxu1 %v818_v18  ;;  %v1444_v17 = vld [vmem:[#allocation10 + $0xc0] sm:$0xff]  ;;  %v1325_v18 = vld [vmem:[#allocation8 + $0x78] sm:$0xff] }
 0x23d   :  { %1099 = vmatpush1.msra.mxu0 %v776_v20  ;;  %1174 = vmatprep.subr.mxu1 %v817_v21  ;;  %v1340_v20 = vld [vmem:[#allocation8 + $0xf0] sm:$0xff]  ;;  %v1443_v21 = vld [vmem:[#allocation10 + $0xb8] sm:$0xff] }
 0x23e   :  { %1100 = vmatprep.subr.mxu0 %v775_v22  ;;  %1175 = vmatpush1.msra.mxu1 %v816_v23  ;;  %v1324_v22 = vld [vmem:[#allocation8 + $0x70] sm:$0xff]  ;;  %v1427_v23 = vld [vmem:[#allocation10 + $0x38] sm:$0xff] }
 0x23f   :  { %1101 = vmatpush1.msra.mxu0 %v774_v24  ;;  %1176 = vmatprep.subr.mxu1 %v815_v25  ;;  %v1339_v24 = vld [vmem:[#allocation8 + $0xe8] sm:$0xff]  ;;  %v1442_v25 = vld [vmem:[#allocation10 + $0xb0] sm:$0xff] }
 0x240   :  { %1102 = vmatprep.subr.mxu0 %v773_v28  ;;  %1177 = vmatpush1.msra.mxu1 %v814_v31  ;;  %v1323_v28 = vld [vmem:[#allocation8 + $0x68] sm:$0xff]  ;;  %v1426_v31 = vld [vmem:[#allocation10 + $0x30] sm:$0xff] }
 0x241   :  { %1103 = vmatpush1.msra.mxu0 %v772_v35  ;;  %1178 = vmatprep.subr.mxu1 %v813_v36  ;;  %v1441_v35 = vld [vmem:[#allocation10 + $0xa8] sm:$0xff]  ;;  %v1322_v36 = vld [vmem:[#allocation8 + $0x60] sm:$0xff] }
 0x242   :  { %1104 = vmatprep.subr.mxu0 %v771_v37  ;;  %1179 = vmatpush1.msra.mxu1 %v812_v38  ;;  %v1425_v37 = vld [vmem:[#allocation10 + $0x28] sm:$0xff]  ;;  %v1337_v38 = vld [vmem:[#allocation8 + $0xd8] sm:$0xff] }
 0x243   :  { %1105 = vmatpush1.msra.mxu0 %v770_v39  ;;  %1180 = vmatprep.subr.mxu1 %v811_v42  ;;  %v1440_v39 = vld [vmem:[#allocation10 + $0xa0] sm:$0xff]  ;;  %v1321_v42 = vld [vmem:[#allocation8 + $0x58] sm:$0xff] }
 0x244   :  { %1106 = vmatprep.subr.mxu0 %v769_v44  ;;  %1181 = vmatpush1.msra.mxu1 %v810_v45  ;;  %v1336_v44 = vld [vmem:[#allocation8 + $0xd0] sm:$0xff]  ;;  %v1439_v45 = vld [vmem:[#allocation10 + $0x98] sm:$0xff] }
 0x245   :  { %1107 = vmatpush1.msra.mxu0 %v768_v47  ;;  %1182 = vmatprep.subr.mxu1 %v809_v48  ;;  %v1423_v47 = vld [vmem:[#allocation10 + $0x18] sm:$0xff]  ;;  %v1335_v48 = vld [vmem:[#allocation8 + $0xc8] sm:$0xff] }
 0x246   :  { %1108 = vmatprep.subr.mxu0 %v767_v49  ;;  %1183 = vmatpush1.msra.mxu1 %v808_v50  ;;  %v1438_v49 = vld [vmem:[#allocation10 + $0x90] sm:$0xff]  ;;  %v1319_v50 = vld [vmem:[#allocation8 + $0x48] sm:$0xff] }
 0x247   :  { %1109 = vmatpush1.msra.mxu0 %v766_v53  ;;  %1184 = vmatprep.subr.mxu1 %v807_v51  ;;  %v1334_v53 = vld [vmem:[#allocation8 + $0xc0] sm:$0xff]  ;;  %v1437_v51 = vld [vmem:[#allocation10 + $0x88] sm:$0xff] }
 0x248   :  { %1143 = vmatmul.mubr.f32.vlgmr.msra.gmra.mxu0 %v1076_v56  ;;  %1185 = vmatpush1.msra.mxu1 %v806_v26  ;;  %v1333_v26 = vld [vmem:[#allocation8 + $0xb8] sm:$0xff] }
 0x249   :  { %1186 = vmatprep.subr.mxu1 %v805_v29  ;;  %1226 = vmatprep.mubr.f32.mxu1 %v2106_v13  ;;  %v1434_v13 = vld [vmem:[#allocation10 + $0x70] sm:$0xff]  ;;  %v1436_v29 = vld [vmem:[#allocation10 + $0x80] sm:$0xff]  ;;  %v1317_v56 = vld [vmem:[#allocation8 + $0x38] sm:$0xff] }
 0x24a   :  { %1187 = vmatpush1.msra.mxu1 %v804_v57  ;;  %1750 = vmatprep.subr.mxu0 %v1341_v16  ;;  %v1420_v57 = vld [vmem:[#allocation10] sm:$0xff] }
 0x24b   :  { %1188 = vmatprep.subr.mxu1 %v803_v33  ;;  %1751 = vmatpush3.msra.mxu0 %v1325_v18  ;;  %v1332_v33 = vld [vmem:[#allocation8 + $0xb0] sm:$0xff] }
 0x24c   :  { %1189 = vmatpush1.msra.mxu1 %v802_v30  ;;  %1752 = vmatprep.subr.mxu0 %v1340_v20  ;;  %v1331_v30 = vld [vmem:[#allocation8 + $0xa8] sm:$0xff] }
 0x24d   :  { %1190 = vmatprep.subr.mxu1 %v801_v59  ;;  %1753 = vmatpush3.msra.mxu0 %v1324_v22  ;;  %v1315_v59 = vld [vmem:[#allocation8 + $0x28] sm:$0xff] }
 0x24e   :  { %1191 = vmatpush1.msra.mxu1 %v800_v61  ;;  %1754 = vmatprep.subr.mxu0 %v1339_v24  ;;  %v1314_v61 = vld [vmem:[#allocation8 + $0x20] sm:$0xff] }
 0x24f   :  { %1192 = vmatprep.subr.mxu1 %v799_v63  ;;  %1755 = vmatpush3.msra.mxu0 %v1323_v28  ;;  %v1313_v63 = vld [vmem:[#allocation8 + $0x18] sm:$0xff] }
 0x250   :  { %1193 = vmatpush1.msra.mxu1 %v798_v0  ;;  %1756 = vmatprep.subr.mxu0 %v1338_v34  ;;  %v1328_v0 = vld [vmem:[#allocation8 + $0x90] sm:$0xff] }
 0x251   :  { %1227 = vmatmul.mubr.f32.vlgmr.msra.gmra.mxu1 %v1160_v1  ;;  %1785 = vmatprep.subr.mxu1 %v1451_v2  ;;  %v1312_v1 = vld [vmem:[#allocation8 + $0x10] sm:$0xff]  ;;  %v1327_v2 = vld [vmem:[#allocation8 + $0x88] sm:$0xff] }
 0x252   :  { %1786 = vmatpush3.msra.mxu1 %v1435_v3  ;;  %1757 = vmatpush3.msra.mxu0 %v1322_v36  ;;  %v1311_v3 = vld [vmem:[#allocation8 + $0x8] sm:$0xff] }
 0x253   :  { %1787 = vmatprep.subr.mxu1 %v1450_v4  ;;  %1758 = vmatprep.subr.mxu0 %v1337_v38  ;;  %v1326_v4 = vld [vmem:[#allocation8 + $0x80] sm:$0xff] }
 0x254   :  { %1788 = vmatpush3.msra.mxu1 %v1434_v13  ;;  %1759 = vmatpush3.msra.mxu0 %v1321_v42  ;;  %v1310_v13 = vld [vmem:[#allocation8] sm:$0xff] }
 0x255   :  { %1789 = vmatprep.subr.mxu1 %v1449_v5  ;;  %1760 = vmatprep.subr.mxu0 %v1336_v44  ;;  %v1574_v5 = vld [vmem:[%s2584_s9 + $0xf8] sm:$0xff] }
 0x256   :  { %1790 = vmatpush3.msra.mxu1 %v1433_v6  ;;  %1761 = vmatpush3.msra.mxu0 %v1320_v46 }
 0x257   :  { %1791 = vmatprep.subr.mxu1 %v1448_v7  ;;  %1762 = vmatprep.subr.mxu0 %v1335_v48 }
 0x258   :  { %1792 = vmatpush3.msra.mxu1 %v1432_v8  ;;  %1763 = vmatpush3.msra.mxu0 %v1319_v50 }
 0x259   :  { %1793 = vmatprep.subr.mxu1 %v1447_v9  ;;  %1764 = vmatprep.subr.mxu0 %v1334_v53 }
 0x25a   :  { %1794 = vmatpush3.msra.mxu1 %v1431_v10  ;;  %1765 = vmatpush3.msra.mxu0 %v1318_v54 }
 0x25b   :  { %1795 = vmatprep.subr.mxu1 %v1446_v11  ;;  %1766 = vmatprep.subr.mxu0 %v1333_v26  ;;  %v830_v11 = vld [vmem:[%s2581_s6] sm:$0x3] }
 0x25c   :  { %1796 = vmatpush3.msra.mxu1 %v1430_v12  ;;  %1767 = vmatpush3.msra.mxu0 %v1317_v56 }
 0x25d   :  { %1797 = vmatprep.subr.mxu1 %v1445_v14  ;;  %1768 = vmatprep.subr.mxu0 %v1332_v33 }
 0x25e   :  { %1798 = vmatpush3.msra.mxu1 %v1429_v15  ;;  %1769 = vmatpush3.msra.mxu0 %v1316_v58 }
 0x25f   :  { %1799 = vmatprep.subr.mxu1 %v1444_v17  ;;  %1770 = vmatprep.subr.mxu0 %v1331_v30  ;;  %v1239_v17 = vrot.slane %v830_v11, %v2232_v41 }
 0x260   :  { %1800 = vmatpush3.msra.mxu1 %v1428_v19  ;;  %1771 = vmatpush3.msra.mxu0 %v1315_v59 }
 0x261   :  { %1801 = vmatprep.subr.mxu1 %v1443_v21  ;;  %1772 = vmatprep.subr.mxu0 %v1330_v60  ;;  %v1243_v21 = vrot.slane %v830_v11, %v2229_v40 }
 0x262   :  { %1802 = vmatpush3.msra.mxu1 %v1427_v23  ;;  %1773 = vmatpush3.msra.mxu0 %v1314_v61 }
 0x263   :  { %1803 = vmatprep.subr.mxu1 %v1442_v25  ;;  %1774 = vmatprep.subr.mxu0 %v1329_v62 }
 0x264   :  { %1804 = vmatpush3.msra.mxu1 %v1426_v31  ;;  %1775 = vmatpush3.msra.mxu0 %v1313_v63 }
 0x265   :  { %1805 = vmatprep.subr.mxu1 %v1441_v35  ;;  %1776 = vmatprep.subr.mxu0 %v1328_v0  ;;  %v1458_v35 = vsub.s32 3, %v2220_v27 }
 0x266   :  { %1806 = vmatpush3.msra.mxu1 %v1425_v37  ;;  %1777 = vmatpush3.msra.mxu0 %v1312_v1 }
 0x267   :  { %1807 = vmatprep.subr.mxu1 %v1440_v39  ;;  %1778 = vmatprep.subr.mxu0 %v1327_v2 }
 0x268   :  { %1808 = vmatpush3.msra.mxu1 %v1424_v43  ;;  %1779 = vmatpush3.msra.mxu0 %v1311_v3 }
 0x269   :  { %1809 = vmatprep.subr.mxu1 %v1439_v45  ;;  %1780 = vmatprep.subr.mxu0 %v1326_v4  ;;  %v1581_v4 = vsub.s32 2, %v2220_v27  ;;  %v1573_v27 = vld [vmem:[%s2584_s9 + $0xf0] sm:$0xff] }
 0x26a   :  { %1810 = vmatpush3.msra.mxu1 %v1423_v47  ;;  %1781 = vmatpush3.msra.mxu0 %v1310_v13 }
 0x26b   :  { %1811 = vmatprep.subr.mxu1 %v1438_v49  ;;  %1820 = vmatprep.subr.mxu0 %v1574_v5 }
 0x26c   :  { %1812 = vmatpush3.msra.mxu1 %v1422_v52 }
 0x26d   :  { %1813 = vmatprep.subr.mxu1 %v1437_v51 }
 0x26e   :  { %1814 = vmatpush3.msra.mxu1 %v1421_v55 }
 0x26f   :  { %1815 = vmatprep.subr.mxu1 %v1436_v29 }
 0x270   :  { %1816 = vmatpush3.msra.mxu1 %v1420_v57 }
 0x2e8   :  { %v983_v6 = vpop.f32.mrf.mxu0 }
 0x2ea   :  { %v985_v7 = vpop.f32.mrf.mxu0 }
 0x2f1   :  { %v1065_v8 = vpop.f32.mrf.mxu1 }
 0x2f2   :  { %v1066_v12 = vadd.f32 %v1065_v8, %v983_v6 }
 0x2f3   :  { %v1067_v10 = vpop.f32.mrf.mxu1 }
 0x2f4   :  { %v1068_v15 = vadd.f32 %v1067_v10, %v985_v7  ;;  %v1558_v10 = vld [vmem:[%s2584_s9 + $0x78] sm:$0xff] }
 0x308   :  { %v1144_v9 = vpop.f32.mrf.mxu0 }
 0x309   :  { %v1149_v16 = vadd.f32 %v1144_v9, %v1066_v12 }
 0x30a   :  { %v1146_v14 = vpop.f32.mrf.mxu0 }
 0x30b   :  { %v1150_v19 = vadd.f32 %v1146_v14, %v1068_v15  ;;  %v1557_v15 = vld [vmem:[%s2584_s9 + $0x70] sm:$0xff] }
 0x311   :  { %v1228_v18 = vpop.f32.mrf.mxu1 }
 0x312   :  { %v1233_v20 = vadd.f32 %v1228_v18, %v1149_v16  ;;  %v1572_v16 = vld [vmem:[%s2584_s9 + $0xe8] sm:$0xff]  ;;  %v1571_v18 = vld [vmem:[%s2584_s9 + $0xe0] sm:$0xff] }
 0x313   :  { %v1230_v22 = vpop.f32.mrf.mxu1 }
 0x314   :  { %v1246_v23 = vadd.f32 %v1239_v17, %v1233_v20  ;;  %v1234_v24 = vadd.f32 %v1230_v22, %v1150_v19  ;;  %v1556_v17 = vld [vmem:[%s2584_s9 + $0x68] sm:$0xff]  ;;  %v1555_v19 = vld [vmem:[%s2584_s9 + $0x60] sm:$0xff]  ;;  %v1570_v20 = vld [vmem:[%s2584_s9 + $0xd8] sm:$0xff] }
 0x315   :  { %v1569_v22 = vld [vmem:[%s2584_s9 + $0xd0] sm:$0xff] }
 0x316   :  { %v1247_v25 = vadd.f32 %v1243_v21, %v1234_v24  ;;  %v1248_v28 = vmax.f32 %v1246_v23, 0.0  ;;  %v1554_v21 = vld [vmem:[%s2584_s9 + $0x58] sm:$0xff]  ;;  %v1553_v23 = vld [vmem:[%s2584_s9 + $0x50] sm:$0xff]  ;;  %v1568_v24 = vld [vmem:[%s2584_s9 + $0xc8] sm:$0xff] }
 0x318   :  { %v1249_v31 = vmax.f32 %v1247_v25, 0.0  ;;  %v1552_v25 = vld [vmem:[%s2584_s9 + $0x48] sm:$0xff] }
 0x31a   :  { %v1252_v34 = vcombine.low %v1248_v28, %v1249_v31  ;;  %v1567_v28 = vld [vmem:[%s2584_s9 + $0xc0] sm:$0xff] }
 0x31b   :  { %v1551_v31 = vld [vmem:[%s2584_s9 + $0x40] sm:$0xff] }
 0x31c   :  { %v2443_v36 = vrot.slane %v1252_v34, %v2223_v32  ;;  %v1566_v34 = vld [vmem:[%s2584_s9 + $0xb8] sm:$0xff] }
 0x31e   :  { %v2447_v37 = vcombine.high %v2443_v36, %v2443_v36  ;;  %v1267_v38 = vrot.slane %v2443_v36, %v2223_v32  ;;  %v1459_v39 = vrot.slane %v2443_v36, %v1458_v35  ;;  %v1455_v42 = vrot.slane %v2443_v36, %v2229_v40 }
 0x31f   :  { %v1582_v11 = vrot.slane %v2443_v36, %v1581_v4 }
 0x320   :  { %v1467_v43 = vrot.slane %v2447_v37, %v1458_v35  ;;  %v1463_v44 = vrot.slane %v2447_v37, %v2229_v40  ;;  %v1268_v45 = vcombine.high %v1267_v38, %v1267_v38  ;;  %v1275_v46 = vrot.slane %v2447_v37, %v2223_v32  ;;  %v1550_v35 = vld [vmem:[%s2584_s9 + $0x38] sm:$0xff] }
 0x321   :  { %v1282_v47 = vsel %vm1281_vm0, %v1267_v38, 0.0  ;;  %v1590_v7 = vrot.slane %v2447_v37, %v1581_v4  ;;  %v1565_v38 = vld [vmem:[%s2584_s9 + $0xb0] sm:$0xff] }
 0x322   :  { %v1469_v48 = vsel %vm351_vm4, %v1467_v43, %v1459_v39  ;;  %v1468_v49 = vsel %vm351_vm4, %v1463_v44, %v1455_v42  ;;  %v1276_v50 = vcombine.high %v1275_v46, %v1275_v46  ;;  %v1289_v52 = vsel %vm1281_vm0, %v1268_v45, 0.0  ;;  %v1549_v39 = vld [vmem:[%s2584_s9 + $0x30] sm:$0xff]  ;;  %v1564_v42 = vld [vmem:[%s2584_s9 + $0xa8] sm:$0xff]  ;;  %v1563_v44 = vld [vmem:[%s2584_s9 + $0xa0] sm:$0xff] }
 0x323   :  { %1536 = vmatprep.mubr.f32.mxu1 %v1469_v48  ;;  %v1290_v53 = vrot.slane %v1289_v52, 4  ;;  %v1283_v51 = vrot.slane %v1282_v47, 4  ;;  %v1296_v54 = vsel %vm1281_vm0, %v1275_v46, 0.0  ;;  %v1592_v14 = vsel %vm351_vm4, %v1590_v7, %v1582_v11  ;;  %v1548_v43 = vld [vmem:[%s2584_s9 + $0x28] sm:$0xff]  ;;  %v1547_v45 = vld [vmem:[%s2584_s9 + $0x20] sm:$0xff]  ;;  %v1562_v46 = vld [vmem:[%s2584_s9 + $0x98] sm:$0xff] }
 0x324   :  { %1537 = vmatmul.mubr.f32.vlgmr.msra.gmra.mxu1 %v1468_v49  ;;  %v1303_v40 = vsel %vm1281_vm0, %v1276_v50, 0.0  ;;  %v1297_v55 = vrot.slane %v1296_v54, 4  ;;  %v1561_v48 = vld [vmem:[%s2584_s9 + $0x90] sm:$0xff]  ;;  %v1560_v50 = vld [vmem:[%s2584_s9 + $0x88] sm:$0xff] }
 0x325   :  { %v1291_v26 = vadd.f32 %v1290_v53, %v1289_v52  ;;  %v1304_v32 = vrot.slane %v1303_v40, 4  ;;  %v1284_v29 = vadd.f32 %v1283_v51, %v1282_v47  ;;  %v1546_v47 = vld [vmem:[%s2584_s9 + $0x18] sm:$0xff]  ;;  %v1545_v49 = vld [vmem:[%s2584_s9 + $0x10] sm:$0xff]  ;;  %v1544_v52 = vld [vmem:[%s2584_s9 + $0x8] sm:$0xff]  ;;  %v1586_v51 = vrot.slane %v2447_v37, %v2232_v41 }
 0x326   :  { %v1298_v56 = vadd.f32 %v1297_v55, %v1296_v54  ;;  %v1559_v53 = vld [vmem:[%s2584_s9 + $0x80] sm:$0xff] }
 0x327   :  { %v1292_v57 = vrot.slane %v1291_v26, 2  ;;  %v1305_v33 = vadd.f32 %v1304_v32, %v1303_v40  ;;  %v1285_v58 = vrot.slane %v1284_v29, 2  ;;  %v1543_v54 = vld [vmem:[%s2584_s9] sm:$0xff]  ;;  %v1578_v40 = vrot.slane %v2443_v36, %v2232_v41 }
 0x328   :  { %v1299_v30 = vrot.slane %v1298_v56, 2 }
 0x329   :  { %v1293_v59 = vadd.f32 %v1292_v57, %v1291_v26  ;;  %v1306_v60 = vrot.slane %v1305_v33, 2  ;;  %v1286_v61 = vadd.f32 %v1285_v58, %v1284_v29  ;;  %v1591_v55 = vsel %vm351_vm4, %v1586_v51, %v1578_v40 }
 0x32a   :  { %v1300_v62 = vadd.f32 %v1299_v30, %v1298_v56 }
 0x32b   :  { %v1294_v63 = vrot.slane %v1293_v59, 1  ;;  %v1307_v0 = vadd.f32 %v1306_v60, %v1305_v33  ;;  %v1287_v1 = vrot.slane %v1286_v61, 1  ;;  %v1700_v60 = vld [vmem:[%s2585_s10] ss:$0 sm:$0xff] }
 0x32c   :  { %v1301_v2 = vrot.slane %v1300_v62, 1 }
 0x32d   :  { %v1308_v3 = vrot.slane %v1307_v0, 1  ;;  %v1295_v5 = vadd.f32 %v1294_v63, %v1293_v59  ;;  %v1288_v8 = vadd.f32 %v1287_v1, %v1286_v61 }
 0x32e   :  { %v1302_v13 = vadd.f32 %v1301_v2, %v1300_v62 }
 0x32f   :  { %v1309_v6 = vadd.f32 %v1308_v3, %v1307_v0 }
 0x330   :  { %v1346_v12 = vsel %vm351_vm4, %v1302_v13, %v1288_v8 }
 0x331   :  { %v1347_v9 = vsel %vm351_vm4, %v1309_v6, %v1295_v5 }
 0x332   :  { %1414 = vmatprep.mubr.f32.mxu0 %v1347_v9 }
 0x333   :  { %1415 = vmatmul.mubr.f32.vlgmr.msra.gmra.mxu0 %v1346_v12 }
 0x334   :  { %1821 = vmatpush3.msra.mxu0 %v1558_v10  ;;  %1659 = vmatprep.mubr.f32.mxu0 %v1592_v14 }
 0x335   :  { %1822 = vmatprep.subr.mxu0 %v1573_v27 }
 0x336   :  { %1823 = vmatpush3.msra.mxu0 %v1557_v15 }
 0x337   :  { %1824 = vmatprep.subr.mxu0 %v1572_v16 }
 0x338   :  { %1825 = vmatpush3.msra.mxu0 %v1556_v17 }
 0x339   :  { %1826 = vmatprep.subr.mxu0 %v1571_v18 }
 0x33a   :  { %1827 = vmatpush3.msra.mxu0 %v1555_v19 }
 0x33b   :  { %1828 = vmatprep.subr.mxu0 %v1570_v20 }
 0x33c   :  { %1829 = vmatpush3.msra.mxu0 %v1554_v21 }
 0x33d   :  { %1830 = vmatprep.subr.mxu0 %v1569_v22 }
 0x33e   :  { %1831 = vmatpush3.msra.mxu0 %v1553_v23 }
 0x33f   :  { %1832 = vmatprep.subr.mxu0 %v1568_v24 }
 0x340   :  { %1833 = vmatpush3.msra.mxu0 %v1552_v25 }
 0x341   :  { %1834 = vmatprep.subr.mxu0 %v1567_v28 }
 0x342   :  { %1835 = vmatpush3.msra.mxu0 %v1551_v31 }
 0x343   :  { %1836 = vmatprep.subr.mxu0 %v1566_v34 }
 0x344   :  { %1837 = vmatpush3.msra.mxu0 %v1550_v35 }
 0x345   :  { %1838 = vmatprep.subr.mxu0 %v1565_v38 }
 0x346   :  { %1839 = vmatpush3.msra.mxu0 %v1549_v39 }
 0x347   :  { %1840 = vmatprep.subr.mxu0 %v1564_v42 }
 0x348   :  { %1841 = vmatpush3.msra.mxu0 %v1548_v43 }
 0x349   :  { %1842 = vmatprep.subr.mxu0 %v1563_v44 }
 0x34a   :  { %1843 = vmatpush3.msra.mxu0 %v1547_v45 }
 0x34b   :  { %1844 = vmatprep.subr.mxu0 %v1562_v46 }
 0x34c   :  { %1845 = vmatpush3.msra.mxu0 %v1546_v47 }
 0x34d   :  { %1846 = vmatprep.subr.mxu0 %v1561_v48 }
 0x34e   :  { %1847 = vmatpush3.msra.mxu0 %v1545_v49 }
 0x34f   :  { %1848 = vmatprep.subr.mxu0 %v1560_v50 }
 0x350   :  { %1849 = vmatpush3.msra.mxu0 %v1544_v52 }
 0x351   :  { %1850 = vmatprep.subr.mxu0 %v1559_v53 }
 0x352   :  { %1851 = vmatpush3.msra.mxu0 %v1543_v54 }
 0x353   :  { %1660 = vmatmul.mubr.f32.vlgmr.msra.gmra.mxu0 %v1591_v55 }
 0x3e4   :  { %v1817_v32 = vpop.f32.mrf.mxu1 }
 0x3e6   :  { %v1818_v56 = vpop.f32.mrf.mxu1 }
 0x3e7   :  { %v1819_v33 = vadd.f32 %v1818_v56, %v1817_v32 }
 0x3f3   :  { %v1782_v26 = vpop.f32.mrf.mxu0 }
 0x3f5   :  { %v1783_v29 = vpop.f32.mrf.mxu0 }
 0x3f6   :  { %v1784_v57 = vadd.f32 %v1783_v29, %v1782_v26 }
 0x3f8   :  { %v1542_v30 = vsub.f32 %v1784_v57, %v1819_v33 }
 0x413   :  { %v1852_v37 = vpop.f32.mrf.mxu0 }
 0x415   :  { %v1853_v58 = vpop.f32.mrf.mxu0 }
 0x416   :  { %v1854_v59 = vadd.f32 %v1853_v58, %v1852_v37 }
 0x418   :  { %v1665_v41 = vsub.f32 %v1542_v30, %v1854_v59 }
 0x41a   :  { %v1673_v36 = vadd.f32 %v1700_v60, %v1665_v41 }
 0x41c   :  { %1674 = vst [vmem:[#allocation11] sm:$0x3] %v1673_v36 }
 0x41d   :  { %2080 = shalt.err (!%p2077_p1)
}
 0x41e   :  { %1684 = dma.vmem_to_hbm [thread:$0]  %s1682_s17, 32, %s2586_s11, [#allocation4]  }
 0x41f   :  { %2095 = dma.done.wait [#allocation4], 32  }
 0x420   :  { %2096 = vsyncadd [#allocation4], 4294967264 }
 0x421   :  { %1688 = vsyncpa [#allocation3], 1 }
 0x422   :  { %1689 = vsyncpa [#allocation6], 1 }
 0x423   :  { %1690 = vsyncpa [#allocation9], 1 }
 0x424   :  { %1691 = vsyncpa [#allocation4], 1 }

</bundles_post_ra>
